<compile_context>
chip_gen: v7x
topology: tpu7x:2x2x1
jax: 0.10.0
libtpu: 0.0.40
codegen_flags: <defaults>
</compile_context>

<pallas_src>
import functools

import jax
import jax.numpy as jnp
import numpy as np
from jax.experimental import pallas as pl
from jax.experimental.pallas import tpu as pltpu

BN_EPS = 1e-5
LANE = 128
SUBLANE_BF16 = 16


def _round_up(x, m):
    return -(-x // m) * m


def _choose_batch_tiling(B, max_block_b, *, granule=SUBLANE_BF16, min_blocks=2):
    """Batch tile: sublane-aligned for bf16, low padding waste, and >= 2 grid
    blocks when B allows it (so v7x can shard the parallel batch axis across
    both TensorCores)."""
    b_need = _round_up(B, granule)
    n_blocks = max(min_blocks, pl.cdiv(b_need, max_block_b))
    block_b = max(granule, _round_up(pl.cdiv(b_need, n_blocks), granule))
    n_blocks = pl.cdiv(b_need, block_b)
    return block_b, n_blocks * block_b, n_blocks


def _mlp_head_kernel(
    x_ref, labels_ref,
    w1_ref, b1_ref, w2_ref, b2_ref, w3_ref, b3_ref,
    out_ref,
    *, num_classes,
):
    x = x_ref[...]                                           # (TB, K_pad) bf16

    # --- Linear(input_size, 512) + ReLU  (BN1 is folded into w2/b2) ---
    h = jnp.dot(x, w1_ref[...], preferred_element_type=jnp.float32) + b1_ref[...]
    h = jnp.maximum(h, 0.0)

    # --- Linear(512, 256) + ReLU  (BN2 is folded into w3/b3) ---
    h = jnp.dot(h.astype(w2_ref.dtype), w2_ref[...],
                preferred_element_type=jnp.float32) + b2_ref[...]
    h = jnp.maximum(h, 0.0)

    # --- Linear(256, num_classes padded to a 128-lane multiple) ---
    logits = jnp.dot(h.astype(w3_ref.dtype), w3_ref[...],
                     preferred_element_type=jnp.float32) + b3_ref[...]

    # --- per-example CrossEntropyLoss, packed into padded column `num_classes` ---
    # (mean over the *global* batch is taken in JAX, so the grid stays fully parallel)
    col_ids = jax.lax.broadcasted_iota(jnp.int32, logits.shape, 1)       # (TB, C_pad)
    masked = jnp.where(col_ids < num_classes, logits, jnp.float32(-1e30))
    m = jnp.max(masked, axis=-1, keepdims=True)                          # (TB, 1)
    lse = m + jnp.log(jnp.sum(jnp.exp(masked - m), axis=-1, keepdims=True))
    picked = jnp.sum(jnp.where(col_ids == labels_ref[...], logits, 0.0),
                     axis=-1, keepdims=True)                             # (TB, 1)
    per_ex = lse - picked                                                # (TB, 1)

    out_ref[...] = jnp.where(col_ids == num_classes, per_ex, logits).astype(out_ref.dtype)


def init_params(key, input_size, num_classes):
    """Deterministic parameter init matching the shapes of the PyTorch fc head.

    Linear weights are stored [in, out] (transposed from PyTorch's [out, in]);
    biases / BN parameters are stored [1, C].
    """
    ks = jax.random.split(key, 8)

    def linear(kw, kb, fan_in, fan_out):
        bound = 1.0 / np.sqrt(fan_in)
        w = jax.random.uniform(kw, (fan_in, fan_out), jnp.float32, -bound, bound)
        b = jax.random.uniform(kb, (1, fan_out), jnp.float32, -bound, bound)
        return w, b

    w1, b1 = linear(ks[0], ks[1], input_size, 512)
    w2, b2 = linear(ks[2], ks[3], 512, 256)
    w3, b3 = linear(ks[4], ks[5], 256, num_classes)

    def bn(k, c):
        kg, kb2, km, kv = jax.random.split(k, 4)
        return (jax.random.uniform(kg, (1, c), jnp.float32, 0.5, 1.5),    # gamma
                jax.random.uniform(kb2, (1, c), jnp.float32, -0.1, 0.1),  # beta
                jax.random.normal(km, (1, c), jnp.float32) * 0.1,         # running_mean
                jax.random.uniform(kv, (1, c), jnp.float32, 0.5, 1.5))    # running_var

    g1, be1, m1, v1 = bn(ks[6], 512)
    g2, be2, m2, v2 = bn(ks[7], 256)
    return dict(w1=w1, b1=b1, g1=g1, be1=be1, m1=m1, v1=v1,
                w2=w2, b2=b2, g2=g2, be2=be2, m2=m2, v2=v2,
                w3=w3, b3=b3)


def prepare_params(params, *, weight_dtype=jnp.bfloat16, lane=LANE):
    """Fold the eval-mode BatchNorms into the following Linears, pad to
    MXU/lane-friendly shapes (with one spare class column reserved for the
    per-example CE loss) and cast the weight matrices to bf16."""
    w1, b1 = params["w1"], params["b1"]          # (in, 512), (1, 512)
    w2, b2 = params["w2"], params["b2"]          # (512, 256), (1, 256)
    w3, b3 = params["w3"], params["b3"]          # (256, C),   (1, C)

    # Eval-mode BN -> per-channel affine (scale, shift).
    s1 = params["g1"] * jax.lax.rsqrt(params["v1"] + BN_EPS)
    t1 = params["be1"] - params["m1"] * s1
    s2 = params["g2"] * jax.lax.rsqrt(params["v2"] + BN_EPS)
    t2 = params["be2"] - params["m2"] * s2

    # Fold BN1 into Linear2 and BN2 into Linear3.
    w2f = s1.reshape(-1, 1) * w2                 # diag(s1) @ w2
    b2f = t1 @ w2 + b2
    w3f = s2.reshape(-1, 1) * w3                 # diag(s2) @ w3
    b3f = t2 @ w3 + b3

    in_size = w1.shape[0]
    num_classes = w3.shape[1]
    k_pad = _round_up(in_size, lane)             # no-op when already lane-aligned
    c_pad = _round_up(num_classes + 1, lane)     # +1 spare column for the CE loss

    w1p = jnp.pad(w1, ((0, k_pad - in_size), (0, 0)))                  # pad K with zeros
    w3p = jnp.pad(w3f, ((0, 0), (0, c_pad - num_classes)))             # pad classes
    b3p = jnp.pad(b3f, ((0, 0), (0, c_pad - num_classes)))

    return dict(
        w1=w1p.astype(weight_dtype), b1=b1.astype(jnp.float32),
        w2=w2f.astype(weight_dtype), b2=b2f.astype(jnp.float32),
        w3=w3p.astype(weight_dtype), b3=b3p.astype(jnp.float32),
    )


@functools.partial(jax.jit, static_argnames=("num_classes", "max_block_b"))
def resnet_for_vectors_forward(features, labels, prepared, *, num_classes, max_block_b=512):
    """Returns {'loss': scalar (None if labels is None), 'logits': [B, num_classes]}."""
    B, in_size = features.shape
    k_pad, h1 = prepared["w1"].shape
    h2 = prepared["w2"].shape[1]
    c_pad = prepared["w3"].shape[1]
    block_b, b_pad, n_blocks = _choose_batch_tiling(B, max_block_b)

    # Fused pad + bf16 cast: one XLA op producing the padded bf16 feature slab
    # (no intermediate f32 padded copy in HBM).  Pad is skipped entirely when
    # B and in_size already match the tiling.
    x = features.astype(jnp.bfloat16)
    if (b_pad, k_pad) != (B, in_size):
        x = jnp.pad(x, ((0, b_pad - B), (0, k_pad - in_size)))

    labels_arr = labels if labels is not None else jnp.zeros((B,), jnp.int32)
    labels2d = jnp.pad(labels_arr.astype(jnp.int32), (0, b_pad - B)).reshape(b_pad, 1)

    batch_row = lambda i: (i, 0)   # streamed per grid step
    const = lambda i: (0, 0)       # VMEM-resident across the whole grid

    wbytes = int(sum(int(np.prod(prepared[k].shape)) * prepared[k].dtype.itemsize
                     for k in ("w1", "b1", "w2", "b2", "w3", "b3")))
    cost = pl.CostEstimate(
        flops=2 * b_pad * (k_pad * h1 + h1 * h2 + h2 * c_pad),
        transcendentals=b_pad * (c_pad + 1),
        bytes_accessed=int(b_pad * k_pad * 2        # bf16 features in
                           + b_pad * 4              # labels in
                           + wbytes                 # resident weights
                           + b_pad * c_pad * 2),    # bf16 logits+loss out
    )
    # Explicit scoped-VMEM budget (v5e default is only 16 MiB): resident weights
    # (double-buffered by default), streamed bf16 feature/output tiles, the
    # lane-padded labels tile and f32 intermediates, with 2x headroom; clamped
    # to 64 MiB so it stays valid on v7x.
    vmem_est = (2 * wbytes
                + 2 * block_b * k_pad * 2
                + 2 * block_b * LANE * 4
                + 2 * block_b * c_pad * 2
                + 4 * block_b * (h1 + h2 + c_pad) * 4)
    vmem_limit = int(min(max(2 * vmem_est, 32 << 20), 64 << 20))

    combined = pl.pallas_call(
        functools.partial(_mlp_head_kernel, num_classes=num_classes),
        grid=(n_blocks,),
        in_specs=[
            pl.BlockSpec((block_b, k_pad), batch_row),   # features tile (bf16)
            pl.BlockSpec((block_b, 1), batch_row),       # labels tile
            pl.BlockSpec((k_pad, h1), const),            # w1 (resident, bf16)
            pl.BlockSpec((1, h1), const),                # b1
            pl.BlockSpec((h1, h2), const),               # w2 (BN1 folded)
            pl.BlockSpec((1, h2), const),                # b2
            pl.BlockSpec((h2, c_pad), const),            # w3 (BN2 folded, padded)
            pl.BlockSpec((1, c_pad), const),             # b3
        ],
        out_specs=pl.BlockSpec((block_b, c_pad), batch_row),  # lane-dense logits + loss col
        out_shape=jax.ShapeDtypeStruct((b_pad, c_pad), jnp.bfloat16),
        compiler_params=pltpu.CompilerParams(
            dimension_semantics=("parallel",),
            vmem_limit_bytes=vmem_limit),
        cost_estimate=cost,
    )(x, labels2d,
      prepared["w1"], prepared["b1"],
      prepared["w2"], prepared["b2"],
      prepared["w3"], prepared["b3"])

    logits = combined[:B, :num_classes].astype(jnp.float32)
    loss = (jnp.mean(combined[:B, num_classes].astype(jnp.float32))
            if labels is not None else None)
    return {"loss": loss, "logits": logits}


def _reference_forward(features, labels, params):
    """Pure-JAX f32 reference implementing the original module semantics."""
    def bn(x, g, be, m, v):
        return (x - m) * jax.lax.rsqrt(v + BN_EPS) * g + be

    h = jnp.maximum(features @ params["w1"] + params["b1"], 0.0)
    h = bn(h, params["g1"], params["be1"], params["m1"], params["v1"])
    h = jnp.maximum(h @ params["w2"] + params["b2"], 0.0)
    h = bn(h, params["g2"], params["be2"], params["m2"], params["v2"])
    logits = h @ params["w3"] + params["b3"]
    lse = jax.scipy.special.logsumexp(logits, axis=-1)
    picked = jnp.take_along_axis(logits, labels[:, None], axis=-1)[:, 0]
    loss = jnp.mean(lse - picked)
    return loss, logits


if __name__ == "__main__":
    B = 200             # not a multiple of the batch tile -> exercises padding path
    INPUT_SIZE = 32
    NUM_CLASSES = 10

    key = jax.random.PRNGKey(0)
    k_feat, k_lab, k_par = jax.random.split(key, 3)

    features = jax.random.normal(k_feat, (B, INPUT_SIZE), jnp.float32)
    labels = jax.random.randint(k_lab, (B,), 0, NUM_CLASSES, jnp.int32)
    params = init_params(k_par, INPUT_SIZE, NUM_CLASSES)
    prepared = prepare_params(params)

    out = resnet_for_vectors_forward(features, labels, prepared, num_classes=NUM_CLASSES)
    jax.block_until_ready(out)

    ref_loss, ref_logits = _reference_forward(features, labels, params)
    # bf16 weights + bf16 feature/logit streams -> compare against the f32
    # reference with bf16-appropriate tolerances.
    np.testing.assert_allclose(np.asarray(out["logits"]), np.asarray(ref_logits),
                               rtol=5e-2, atol=5e-2)
    np.testing.assert_allclose(np.asarray(out["loss"]), np.asarray(ref_loss),
                               rtol=5e-2, atol=5e-2)

    print("KERNEL_OK")
</pallas_src>

<mosaic_0001>
module attributes {stable_mosaic.version = 11 : i64} {
  func.func @_mlp_head_kernel(%arg0: i32, %arg1: memref<112x128xbf16, #tpu.memory_space<vmem>>, %arg2: memref<112x1xi32, #tpu.memory_space<vmem>>, %arg3: memref<128x512xbf16, #tpu.memory_space<vmem>>, %arg4: memref<1x512xf32, #tpu.memory_space<vmem>>, %arg5: memref<512x256xbf16, #tpu.memory_space<vmem>>, %arg6: memref<1x256xf32, #tpu.memory_space<vmem>>, %arg7: memref<256x128xbf16, #tpu.memory_space<vmem>>, %arg8: memref<1x128xf32, #tpu.memory_space<vmem>>, %arg9: memref<112x128xbf16, #tpu.memory_space<vmem>>) attributes {dimension_semantics = [#tpu.dimension_semantics<parallel>], iteration_bounds = array<i64: 2>, scalar_prefetch = 0 : i64, scratch_operands = 0 : i64, tpu.core_type = #tpu.core_type<tc>, window_params = [{transform_indices = @transform_0, window_bounds = array<i64: 112, 128>}, {transform_indices = @transform_1, window_bounds = array<i64: 112, 1>}, {pipeline_mode = #tpu.pipeline_mode<synchronous>, transform_indices = @transform_2, window_bounds = array<i64: 128, 512>}, {pipeline_mode = #tpu.pipeline_mode<synchronous>, transform_indices = @transform_3, window_bounds = array<i64: 1, 512>}, {pipeline_mode = #tpu.pipeline_mode<synchronous>, transform_indices = @transform_4, window_bounds = array<i64: 512, 256>}, {pipeline_mode = #tpu.pipeline_mode<synchronous>, transform_indices = @transform_5, window_bounds = array<i64: 1, 256>}, {pipeline_mode = #tpu.pipeline_mode<synchronous>, transform_indices = @transform_6, window_bounds = array<i64: 256, 128>}, {pipeline_mode = #tpu.pipeline_mode<synchronous>, transform_indices = @transform_7, window_bounds = array<i64: 1, 128>}, {transform_indices = @transform_8, window_bounds = array<i64: 112, 128>}]} {
    %c0 = arith.constant 0 : index
    %c0_0 = arith.constant 0 : index
    %0 = vector.load %arg1[%c0, %c0_0] : memref<112x128xbf16, #tpu.memory_space<vmem>>, vector<112x128xbf16>
    %c0_1 = arith.constant 0 : index
    %c0_2 = arith.constant 0 : index
    %1 = vector.load %arg3[%c0_1, %c0_2] : memref<128x512xbf16, #tpu.memory_space<vmem>>, vector<128x512xbf16>
    %cst = arith.constant dense<0.000000e+00> : vector<112x512xf32>
    %2 = tpu.matmul %0, %1, %cst {dimension_numbers = #tpu.dot_dimension_numbers<[1], [0], [0], [1], [0, 0, 1, 1], [], []>} : vector<112x128xbf16>, vector<128x512xbf16>, vector<112x512xf32> -> vector<112x512xf32>
    %c0_3 = arith.constant 0 : index
    %c0_4 = arith.constant 0 : index
    %3 = vector.load %arg4[%c0_3, %c0_4] : memref<1x512xf32, #tpu.memory_space<vmem>>, vector<1x512xf32>
    %4 = vector.broadcast %3 : vector<1x512xf32> to vector<112x512xf32>
    %5 = arith.addf %2, %4 : vector<112x512xf32>
    %cst_5 = arith.constant 0.000000e+00 : f32
    %6 = vector.broadcast %cst_5 : f32 to vector<112x512xf32>
    %7 = arith.maximumf %5, %6 : vector<112x512xf32>
    %8 = arith.truncf %7 : vector<112x512xf32> to vector<112x512xbf16>
    %c0_6 = arith.constant 0 : index
    %c0_7 = arith.constant 0 : index
    %9 = vector.load %arg5[%c0_6, %c0_7] : memref<512x256xbf16, #tpu.memory_space<vmem>>, vector<512x256xbf16>
    %cst_8 = arith.constant dense<0.000000e+00> : vector<112x256xf32>
    %10 = tpu.matmul %8, %9, %cst_8 {dimension_numbers = #tpu.dot_dimension_numbers<[1], [0], [0], [1], [0, 0, 1, 1], [], []>} : vector<112x512xbf16>, vector<512x256xbf16>, vector<112x256xf32> -> vector<112x256xf32>
    %c0_9 = arith.constant 0 : index
    %c0_10 = arith.constant 0 : index
    %11 = vector.load %arg6[%c0_9, %c0_10] : memref<1x256xf32, #tpu.memory_space<vmem>>, vector<1x256xf32>
    %12 = vector.broadcast %11 : vector<1x256xf32> to vector<112x256xf32>
    %13 = arith.addf %10, %12 : vector<112x256xf32>
    %cst_11 = arith.constant 0.000000e+00 : f32
    %14 = vector.broadcast %cst_11 : f32 to vector<112x256xf32>
    %15 = arith.maximumf %13, %14 : vector<112x256xf32>
    %16 = arith.truncf %15 : vector<112x256xf32> to vector<112x256xbf16>
    %c0_12 = arith.constant 0 : index
    %c0_13 = arith.constant 0 : index
    %17 = vector.load %arg7[%c0_12, %c0_13] : memref<256x128xbf16, #tpu.memory_space<vmem>>, vector<256x128xbf16>
    %cst_14 = arith.constant dense<0.000000e+00> : vector<112x128xf32>
    %18 = tpu.matmul %16, %17, %cst_14 {dimension_numbers = #tpu.dot_dimension_numbers<[1], [0], [0], [1], [0, 0, 1, 1], [], []>} : vector<112x256xbf16>, vector<256x128xbf16>, vector<112x128xf32> -> vector<112x128xf32>
    %c0_15 = arith.constant 0 : index
    %c0_16 = arith.constant 0 : index
    %19 = vector.load %arg8[%c0_15, %c0_16] : memref<1x128xf32, #tpu.memory_space<vmem>>, vector<1x128xf32>
    %20 = vector.broadcast %19 : vector<1x128xf32> to vector<112x128xf32>
    %21 = arith.addf %18, %20 : vector<112x128xf32>
    %22 = tpu.iota {dimensions = array<i32: 1>} : vector<112x128xi32>
    %c10_i32 = arith.constant 10 : i32
    %23 = vector.broadcast %c10_i32 : i32 to vector<112x128xi32>
    %24 = arith.cmpi slt, %22, %23 : vector<112x128xi32>
    %cst_17 = arith.constant -1.000000e+30 : f32
    %25 = vector.broadcast %cst_17 : f32 to vector<112x128xf32>
    %26 = arith.select %24, %21, %25 : vector<112x128xi1>, vector<112x128xf32>
    %cst_18 = arith.constant dense<0xFF800000> : vector<112xf32>
    %27 = vector.multi_reduction <maximumf>, %26, %cst_18 [1] : vector<112x128xf32> to vector<112xf32>
    %28 = vector.shape_cast %27 : vector<112xf32> to vector<112x1xf32>
    %29 = vector.broadcast %28 : vector<112x1xf32> to vector<112x128xf32>
    %30 = arith.subf %26, %29 : vector<112x128xf32>
    %31 = math.exp %30 : vector<112x128xf32>
    %cst_19 = arith.constant dense<0.000000e+00> : vector<112xf32>
    %32 = vector.multi_reduction <add>, %31, %cst_19 [1] : vector<112x128xf32> to vector<112xf32>
    %33 = vector.shape_cast %32 : vector<112xf32> to vector<112x1xf32>
    %34 = math.log %33 : vector<112x1xf32>
    %35 = arith.addf %28, %34 : vector<112x1xf32>
    %c0_20 = arith.constant 0 : index
    %c0_21 = arith.constant 0 : index
    %36 = vector.load %arg2[%c0_20, %c0_21] : memref<112x1xi32, #tpu.memory_space<vmem>>, vector<112x1xi32>
    %37 = vector.broadcast %36 : vector<112x1xi32> to vector<112x128xi32>
    %38 = arith.cmpi eq, %22, %37 : vector<112x128xi32>
    %cst_22 = arith.constant 0.000000e+00 : f32
    %39 = vector.broadcast %cst_22 : f32 to vector<112x128xf32>
    %40 = arith.select %38, %21, %39 : vector<112x128xi1>, vector<112x128xf32>
    %cst_23 = arith.constant dense<0.000000e+00> : vector<112xf32>
    %41 = vector.multi_reduction <add>, %40, %cst_23 [1] : vector<112x128xf32> to vector<112xf32>
    %42 = vector.shape_cast %41 : vector<112xf32> to vector<112x1xf32>
    %43 = arith.subf %35, %42 : vector<112x1xf32>
    %c10_i32_24 = arith.constant 10 : i32
    %44 = vector.broadcast %c10_i32_24 : i32 to vector<112x128xi32>
    %45 = arith.cmpi eq, %22, %44 : vector<112x128xi32>
    %46 = vector.shape_cast %43 : vector<112x1xf32> to vector<112x1xf32>
    %47 = vector.broadcast %46 : vector<112x1xf32> to vector<112x128xf32>
    %48 = arith.select %45, %47, %21 : vector<112x128xi1>, vector<112x128xf32>
    %49 = arith.truncf %48 : vector<112x128xf32> to vector<112x128xbf16>
    %c0_25 = arith.constant 0 : index
    %c0_26 = arith.constant 0 : index
    %50 = vector.load %arg9[%c0_25, %c0_26] : memref<112x128xbf16, #tpu.memory_space<vmem>>, vector<112x128xbf16>
    tpu.vector_store %arg9[%c0_25, %c0_26], %49 {strides = array<i32>} : memref<112x128xbf16, #tpu.memory_space<vmem>>, vector<112x128xbf16>,
    return
  }
  func.func @transform_0(%arg0: i32) -> (i32, i32) {
    %c0_i32 = arith.constant 0 : i32
    %c0_i32_0 = arith.constant 0 : i32
    return %arg0, %c0_i32 : i32, i32
  }
  func.func @transform_1(%arg0: i32) -> (i32, i32) {
    %c0_i32 = arith.constant 0 : i32
    %c0_i32_0 = arith.constant 0 : i32
    return %arg0, %c0_i32 : i32, i32
  }
  func.func @transform_2(%arg0: i32) -> (i32, i32) {
    %c0_i32 = arith.constant 0 : i32
    %c0_i32_0 = arith.constant 0 : i32
    %c0_i32_1 = arith.constant 0 : i32
    return %c0_i32, %c0_i32_0 : i32, i32
  }
  func.func @transform_3(%arg0: i32) -> (i32, i32) {
    %c0_i32 = arith.constant 0 : i32
    %c0_i32_0 = arith.constant 0 : i32
    %c0_i32_1 = arith.constant 0 : i32
    return %c0_i32, %c0_i32_0 : i32, i32
  }
  func.func @transform_4(%arg0: i32) -> (i32, i32) {
    %c0_i32 = arith.constant 0 : i32
    %c0_i32_0 = arith.constant 0 : i32
    %c0_i32_1 = arith.constant 0 : i32
    return %c0_i32, %c0_i32_0 : i32, i32
  }
  func.func @transform_5(%arg0: i32) -> (i32, i32) {
    %c0_i32 = arith.constant 0 : i32
    %c0_i32_0 = arith.constant 0 : i32
    %c0_i32_1 = arith.constant 0 : i32
    return %c0_i32, %c0_i32_0 : i32, i32
  }
  func.func @transform_6(%arg0: i32) -> (i32, i32) {
    %c0_i32 = arith.constant 0 : i32
    %c0_i32_0 = arith.constant 0 : i32
    %c0_i32_1 = arith.constant 0 : i32
    return %c0_i32, %c0_i32_0 : i32, i32
  }
  func.func @transform_7(%arg0: i32) -> (i32, i32) {
    %c0_i32 = arith.constant 0 : i32
    %c0_i32_0 = arith.constant 0 : i32
    %c0_i32_1 = arith.constant 0 : i32
    return %c0_i32, %c0_i32_0 : i32, i32
  }
  func.func @transform_8(%arg0: i32) -> (i32, i32) {
    %c0_i32 = arith.constant 0 : i32
    %c0_i32_0 = arith.constant 0 : i32
    return %arg0, %c0_i32 : i32, i32
  }
}

</mosaic_0001>

<bundles_post_ra>
// kernel: resnet_for_vectors_forward.1
= control target key start
LH: loop header
LB: loop body
LE: loop exit
PB: predicated region body
PF: predicated region fallthrough
CT: control target
= control target key end

     0   :  { %13 = vsyncpa [#allocation3], 0  ;;  %s2906_s27 = smov 0   ;;  %s3841_s0 = inlined_call_operand.vmem [shape: bf16[224,128], index: 0, kind: input, shape index: {}]   ;;  %s3842_s1 = inlined_call_operand.vmem [shape: s32[224,1], index: 1, kind: input, shape index: {}]   ;;  %s3843_s2 = inlined_call_operand.hbm [shape: bf16[128,512], index: 2, kind: input, shape index: {}]   ;;  %s3844_s3 = inlined_call_operand.vmem [shape: f32[1,512], index: 3, kind: input, shape index: {}]   ;;  %s3845_s4 = inlined_call_operand.vmem [shape: bf16[512,256], index: 4, kind: input, shape index: {}]   ;;  %s3846_s5 = inlined_call_operand.vmem [shape: f32[1,256], index: 5, kind: input, shape index: {}]   ;;  %s3847_s6 = inlined_call_operand.vmem [shape: bf16[256,128], index: 6, kind: input, shape index: {}]   ;;  %s3848_s7 = inlined_call_operand.vmem [shape: f32[1,128], index: 7, kind: input, shape index: {}]   ;;  %s3849_s8 = inlined_call_operand.vmem [shape: bf16[224,128], index: 8, kind: output, shape index: {}]  }
   0x1 LB: > { %s2223_s28 = sadd.s32 4294967295, %s2855_s27   ;;  %p2225_p0 = scmp.ge.s32.totalorder %s2855_s27, 1  ;;  %s2855_s27 = sphi %s2906_s27, %s19_s27  }
   0x2   : > { %p228_p1 = scmp.lt.s32.totalorder %s2855_s27, 3  ;;  %s2857_s29 = smov [#allocation2]  }
   0x3   : > { %s240_s30 = sshll.u32 %s2857_s29, 4  ;;  %p2920_p3 = scmp.eq.s32.totalorder %s2223_s28, 0  ;;  %s241_s30 = int_to_ptr.vmem [resolvable:$true] %s240_s30 }
   0x4   : > { %p2914_p2 = pnand %p2225_p0, %p228_p1  ;;  %s2817_s14 = scalar_lea.hbm %s3843_s2, 4096 }
   0x5   : > { %s3854_s10 = scalar_select %p2920_p3, 1, 0 }
   0x6   : > { %s3853_s9 = scalar_select %p2914_p2, 1, 0 }
   0x7   : > { %p2574_p4 = pneg %p2914_p2  ;;  %p2818_p6 = scmp.ne.s32.totalorder %s3843_s2, %s2817_s14 }
   0x8   : > { %p2824_p10 = scmp.lt.u32.totalorder %s2817_s14, %s3843_s2 }
   0x9   : > { %p2928_p5 = pnand %p2920_p3, %p2574_p4 }
   0xb   : > { %p2819_p7 = pneg %p2928_p5 }
   0xd   : > { %p2820_p8 = pnand %p2819_p7, %p2818_p6 }
   0xf   : > { %p2821_p9 = pneg %p2820_p8 }
  0x11   : > { %p2826_p11 = pnand %p2824_p10, %p2821_p9 }
  0x13   : > { %2829 = shalt.err (!%p2826_p11)
}
  0x14   : > { %s2830_s19 = scalar_lea.vmem %s241_s30, 4096  ;;  %p2838_p1 = scmp.lt.s32.totalorder %s241_s30, %s241_s30 }
  0x15   : > { %p2831_p12 = scmp.ne.s32.totalorder %s241_s30, %s2830_s19  ;;  %p2839_p4 = scmp.lt.s32.totalorder %s2830_s19, %s2830_s19 }
  0x17   : > { %p2833_p13 = pnand %p2831_p12, %p2819_p7  ;;  %p2840_p3 = por %p2839_p4, %p2838_p1 }
  0x19   : > { %p2834_p0 = pneg %p2833_p13 }
  0x1b   : > { %p2841_p2 = pnand %p2840_p3, %p2834_p0 }
  0x1d   : > { %2844 = shalt.err (!%p2841_p2)
}
  0x1e   : > { %s2858_s20 = smov 256   ;;  %s2859_s21 = smov 16  }
  0x1f   : > { %2577 = dma.hbm_to_vmem [thread:$0]  (!%p2928_p5), %s3843_s2, 4096, %s241_s30, [#allocation3], %s2858_s20, %s2858_s20, %s2859_s21  }
  0x20   : > { %p3856_p6 = scmp.ne.s32.totalorder %s3853_s9, 0 }
  0x21   : > { %p3857_p8 = scmp.ne.s32.totalorder (!%p3856_p6), %s3854_s10, 0 }
  0x22   : > { %289 = sbr.rel (%p3856_p6) target bundleno = 1174 (0x496), region = 52 }
  0x29   : > { %2850 = dma.done.wait (%p3857_p8), [#allocation3], 4096  }
  0x2a   : > { %2852 = vsyncadd (%p3857_p8), [#allocation3], 4294963200  ;;  %v2860_v0 = vmov 0   ;;  %v2594_v1 = vld [vmem:[#allocation2 + $0x4] ss:$16 sps:$4 sm:$0xff]   ;;  %s328_s24 = smul.u32 14, %s2223_s28 }
  0x2b   : > { %649 = vmatprep.mubr.bf16.mxu0 %v2860_v0  ;;  %752 = vmatprep.mubr.bf16.mxu1 %v2860_v0  ;;  %v2596_v2 = vld [vmem:[#allocation2] ss:$16 sps:$4 sm:$0xff]   ;;  %v2597_v3 = vld [vmem:[#allocation2 + $0xc] ss:$16 sps:$4 sm:$0xff]   ;;  %v2599_v4 = vld [vmem:[#allocation2 + $0x8] ss:$16 sps:$4 sm:$0xff]  }
  0x2c   : > { %2592 = vset.pattern.permute.xlu0 %v2860_v0  ;;  %2593 = vset.pattern.permute.xlu1 %v2860_v0  ;;  %v2600_v5 = vld [vmem:[#allocation2 + $0x24] ss:$16 sps:$4 sm:$0xff]   ;;  %v2602_v6 = vld [vmem:[#allocation2 + $0x20] ss:$16 sps:$4 sm:$0xff]   ;;  %v2603_v7 = vld [vmem:[#allocation2 + $0x2c] ss:$16 sps:$4 sm:$0xff]  }
  0x2d   : > { %617 = vmatprep.subr.bf16.mxu0 %v2594_v1  ;;  %720 = vmatprep.subr.bf16.mxu1 %v2597_v3  ;;  %v2605_v8 = vld [vmem:[#allocation2 + $0x28] ss:$16 sps:$4 sm:$0xff]   ;;  %v2606_v9 = vld [vmem:[#allocation2 + $0x44] ss:$16 sps:$4 sm:$0xff]   ;;  %v2608_v10 = vld [vmem:[#allocation2 + $0x40] ss:$16 sps:$4 sm:$0xff]  }
  0x2e   : > { %618 = vmatpush1.bf16.msra.mxu0 %v2596_v2  ;;  %721 = vmatpush1.bf16.msra.mxu1 %v2599_v4  ;;  %v2609_v11 = vld [vmem:[#allocation2 + $0x4c] ss:$16 sps:$4 sm:$0xff]   ;;  %v2612_v12 = vld [vmem:[#allocation2 + $0x64] ss:$16 sps:$4 sm:$0xff]   ;;  %v2611_v13 = vld [vmem:[#allocation2 + $0x48] ss:$16 sps:$4 sm:$0xff]  }
  0x2f   : > { %619 = vmatprep.subr.bf16.mxu0 %v2600_v5  ;;  %722 = vmatprep.subr.bf16.mxu1 %v2603_v7  ;;  %p329_p2 = scmp.lt.s32.totalorder %s328_s24, 27  ;;  %v2615_v14 = vld [vmem:[#allocation2 + $0x6c] ss:$16 sps:$4 sm:$0xff]   ;;  %v2614_v15 = vld [vmem:[#allocation2 + $0x60] ss:$16 sps:$4 sm:$0xff]  }
  0x30   : > { %v2618_v16 = vld [vmem:[#allocation2 + $0x84] ss:$16 sps:$4 sm:$0xff]   ;;  %v2617_v17 = vld [vmem:[#allocation2 + $0x68] ss:$16 sps:$4 sm:$0xff]   ;;  %v2621_v18 = vld [vmem:[#allocation2 + $0x8c] ss:$16 sps:$4 sm:$0xff]  }
  0x31   : > { %s3859_s24 = smov (!%p329_p2, %s328_s24), 27  ;;  %v2620_v19 = vld [vmem:[#allocation2 + $0x80] ss:$16 sps:$4 sm:$0xff]   ;;  %v2624_v20 = vld [vmem:[#allocation2 + $0xa4] ss:$16 sps:$4 sm:$0xff]  }
  0x32   : > { %620 = vmatpush1.bf16.msra.mxu0 %v2602_v6  ;;  %723 = vmatpush1.bf16.msra.mxu1 %v2605_v8  ;;  %v2623_v21 = vld [vmem:[#allocation2 + $0x88] ss:$16 sps:$4 sm:$0xff]   ;;  %s2230_s25 = sshll.u32 %s3859_s24, 2  ;;  %v2627_v22 = vld [vmem:[#allocation2 + $0xac] ss:$16 sps:$4 sm:$0xff]   ;;  %s2231_s21 = sshll.u32 %s3859_s24, 3 }
  0x33   : > { %621 = vmatprep.subr.bf16.mxu0 %v2606_v9  ;;  %724 = vmatprep.subr.bf16.mxu1 %v2609_v11  ;;  %v2626_v23 = vld [vmem:[#allocation2 + $0xa0] ss:$16 sps:$4 sm:$0xff]   ;;  %v2630_v24 = vld [vmem:[#allocation2 + $0xc4] ss:$16 sps:$4 sm:$0xff]   ;;  %s2968_s29 = scalar_lea.vmem %s3841_s0, %s2230_s25  ;;  %v2629_v25 = vld [vmem:[#allocation2 + $0xa8] ss:$16 sps:$4 sm:$0xff]   ;;  %s3457_s26 = scalar_lea.vmem %s3842_s1, %s2231_s21 }
  0x34   : > { %v2633_v26 = vld [vmem:[#allocation2 + $0xcc] ss:$16 sps:$4 sm:$0xff]   ;;  %v2632_v27 = vld [vmem:[#allocation2 + $0xc0] ss:$16 sps:$4 sm:$0xff]   ;;  %v2636_v28 = vld [vmem:[#allocation2 + $0xe4] ss:$16 sps:$4 sm:$0xff]   ;;  %s3778_s13 = scalar_lea.vmem %s3849_s8, %s2230_s25 }
  0x35   : > { %v2635_v29 = vld [vmem:[#allocation2 + $0xc8] ss:$16 sps:$4 sm:$0xff]   ;;  %v2639_v30 = vld [vmem:[#allocation2 + $0xec] ss:$16 sps:$4 sm:$0xff]   ;;  %v2638_v31 = vld [vmem:[#allocation2 + $0xe0] ss:$16 sps:$4 sm:$0xff]  }
  0x36   : > { %622 = vmatpush1.bf16.msra.mxu0 %v2608_v10  ;;  %725 = vmatpush1.bf16.msra.mxu1 %v2611_v13  ;;  %v2641_v32 = vld [vmem:[#allocation2 + $0xe8] ss:$16 sps:$4 sm:$0xff]   ;;  %v2651_v33 = vld [vmem:[%s3845_s4 + $0x4] ss:$8 sps:$4 sm:$0xff]   ;;  %v2654_v36 = vld [vmem:[%s3845_s4 + $0x14] ss:$8 sps:$4 sm:$0xff]  }
  0x37   : > { %623 = vmatprep.subr.bf16.mxu0 %v2612_v12  ;;  %726 = vmatprep.subr.bf16.mxu1 %v2615_v14  ;;  %v2642_v34 = vld [vmem:[%s2968_s29] sm:$0xff]   ;;  %v2652_v37 = vld [vmem:[%s3845_s4 + $0x10] ss:$8 sps:$4 sm:$0xff]   ;;  %v2643_v39 = vld [vmem:[%s2968_s29 + $0x8] sm:$0xff]  }
  0x38   : > { %v2649_v35 = vld [vmem:[%s3845_s4] ss:$8 sps:$4 sm:$0xff]   ;;  %v2657_v38 = vld [vmem:[%s3845_s4 + $0x24] ss:$8 sps:$4 sm:$0xff]   ;;  %v2660_v43 = vld [vmem:[%s3845_s4 + $0x34] ss:$8 sps:$4 sm:$0xff]  }
  0x39   : > { %v2992_v40 = vld [vmem:[%s3845_s4 + $0x100] ss:$8 sps:$4 sm:$0xff]   ;;  %v2997_v41 = vld [vmem:[%s3845_s4 + $0x104] ss:$8 sps:$4 sm:$0xff]   ;;  %v3010_v44 = vld [vmem:[%s3845_s4 + $0x114] ss:$8 sps:$4 sm:$0xff]  }
  0x3a   : > { %624 = vmatpush1.bf16.msra.mxu0 %v2614_v15  ;;  %727 = vmatpush1.bf16.msra.mxu1 %v2617_v17  ;;  %v2655_v42 = vld [vmem:[%s3845_s4 + $0x20] ss:$8 sps:$4 sm:$0xff]   ;;  %v2658_v45 = vld [vmem:[%s3845_s4 + $0x30] ss:$8 sps:$4 sm:$0xff]   ;;  %v2663_v47 = vld [vmem:[%s3845_s4 + $0x44] ss:$8 sps:$4 sm:$0xff]  }
  0x3b   : > { %625 = vmatprep.subr.bf16.mxu0 %v2618_v16  ;;  %728 = vmatprep.subr.bf16.mxu1 %v2621_v18  ;;  %v3018_v46 = vld [vmem:[%s3845_s4 + $0x110] ss:$8 sps:$4 sm:$0xff]   ;;  %v3027_v48 = vld [vmem:[%s3845_s4 + $0x124] ss:$8 sps:$4 sm:$0xff]   ;;  %v3036_v50 = vld [vmem:[%s3845_s4 + $0x120] ss:$8 sps:$4 sm:$0xff]  }
  0x3c   : > { %v2644_v49 = vld [vmem:[%s2968_s29 + $0x10] sm:$0xff]   ;;  %v2661_v51 = vld [vmem:[%s3845_s4 + $0x40] ss:$8 sps:$4 sm:$0xff]   ;;  %v3063_v56 = vld [vmem:[%s3845_s4 + $0x144] ss:$8 sps:$4 sm:$0xff]  }
  0x3d   : > { %v2666_v52 = vld [vmem:[%s3845_s4 + $0x54] ss:$8 sps:$4 sm:$0xff]   ;;  %v2664_v54 = vld [vmem:[%s3845_s4 + $0x50] ss:$8 sps:$4 sm:$0xff]   ;;  %v2669_v57 = vld [vmem:[%s3845_s4 + $0x64] ss:$8 sps:$4 sm:$0xff]  }
  0x3e   : > { %626 = vmatpush1.bf16.msra.mxu0 %v2620_v19  ;;  %729 = vmatpush1.bf16.msra.mxu1 %v2623_v21  ;;  %v3048_v53 = vld [vmem:[%s3845_s4 + $0x134] ss:$8 sps:$4 sm:$0xff]   ;;  %v3057_v55 = vld [vmem:[%s3845_s4 + $0x130] ss:$8 sps:$4 sm:$0xff]   ;;  %v2667_v59 = vld [vmem:[%s3845_s4 + $0x60] ss:$8 sps:$4 sm:$0xff]  }
  0x3f   : > { %627 = vmatprep.subr.bf16.mxu0 %v2624_v20  ;;  %730 = vmatprep.subr.bf16.mxu1 %v2627_v22  ;;  %v2645_v58 = vld [vmem:[%s2968_s29 + $0x18] sm:$0xff]   ;;  %v3078_v60 = vld [vmem:[%s3845_s4 + $0x140] ss:$8 sps:$4 sm:$0xff]   ;;  %v3100_v2 = vld [vmem:[%s3845_s4 + $0x164] ss:$8 sps:$4 sm:$0xff]  }
  0x40   : > { %v2675_v61 = vld [vmem:[%s3845_s4 + $0x74] ss:$8 sps:$4 sm:$0xff]   ;;  %v3087_v62 = vld [vmem:[%s3845_s4 + $0x150] ss:$8 sps:$4 sm:$0xff]   ;;  %v2681_v3 = vld [vmem:[%s3845_s4 + $0x84] ss:$8 sps:$4 sm:$0xff]  }
  0x41   : > { %v3092_v63 = vld [vmem:[%s3845_s4 + $0x154] ss:$8 sps:$4 sm:$0xff]   ;;  %v2673_v1 = vld [vmem:[%s3845_s4 + $0x70] ss:$8 sps:$4 sm:$0xff]   ;;  %v2646_v4 = vld [vmem:[%s2968_s29 + $0x20] sm:$0xff]  }
  0x42   : > { %628 = vmatpush1.bf16.msra.mxu0 %v2626_v23  ;;  %731 = vmatpush1.bf16.msra.mxu1 %v2629_v25  ;;  %v3111_v5 = vld [vmem:[%s3845_s4 + $0x160] ss:$8 sps:$4 sm:$0xff]   ;;  %v2687_v7 = vld [vmem:[%s3845_s4 + $0x94] ss:$8 sps:$4 sm:$0xff]   ;;  %v2685_v8 = vld [vmem:[%s3845_s4 + $0x90] ss:$8 sps:$4 sm:$0xff]  }
  0x43   : > { %629 = vmatprep.subr.bf16.mxu0 %v2630_v24  ;;  %732 = vmatprep.subr.bf16.mxu1 %v2633_v26  ;;  %v2679_v6 = vld [vmem:[%s3845_s4 + $0x80] ss:$8 sps:$4 sm:$0xff]   ;;  %v2693_v9 = vld [vmem:[%s3845_s4 + $0xa4] ss:$8 sps:$4 sm:$0xff]   ;;  %v2699_v12 = vld [vmem:[%s3845_s4 + $0xb4] ss:$8 sps:$4 sm:$0xff]  }
  0x44   : > { %v2647_v10 = vld [vmem:[%s2968_s29 + $0x28] sm:$0xff]   ;;  %v2697_v13 = vld [vmem:[%s3845_s4 + $0xb0] ss:$8 sps:$4 sm:$0xff]   ;;  %v2711_v17 = vld [vmem:[%s3845_s4 + $0xd4] ss:$8 sps:$4 sm:$0xff]  }
  0x45   : > { %v2691_v11 = vld [vmem:[%s3845_s4 + $0xa0] ss:$8 sps:$4 sm:$0xff]   ;;  %v2705_v14 = vld [vmem:[%s3845_s4 + $0xc4] ss:$8 sps:$4 sm:$0xff]   ;;  %v2648_v15 = vld [vmem:[%s2968_s29 + $0x30] sm:$0xff]  }
  0x46   : > { %630 = vmatpush1.bf16.msra.mxu0 %v2632_v27  ;;  %733 = vmatpush1.bf16.msra.mxu1 %v2635_v29  ;;  %v2703_v16 = vld [vmem:[%s3845_s4 + $0xc0] ss:$8 sps:$4 sm:$0xff]   ;;  %v2709_v18 = vld [vmem:[%s3845_s4 + $0xd0] ss:$8 sps:$4 sm:$0xff]   ;;  %v2717_v20 = vld [vmem:[%s3845_s4 + $0xe4] ss:$8 sps:$4 sm:$0xff]  }
  0x47   : > { %631 = vmatprep.subr.bf16.mxu0 %v2636_v28  ;;  %734 = vmatprep.subr.bf16.mxu1 %v2639_v30  ;;  %v3165_v19 = vld [vmem:[%s3845_s4 + $0x170] ss:$8 sps:$4 sm:$0xff]   ;;  %v2715_v21 = vld [vmem:[%s3845_s4 + $0xe0] ss:$8 sps:$4 sm:$0xff]   ;;  %v3178_v22 = vld [vmem:[%s3845_s4 + $0x184] ss:$8 sps:$4 sm:$0xff]  }
  0x48   : > { %v3183_v23 = vld [vmem:[%s3845_s4 + $0x180] ss:$8 sps:$4 sm:$0xff]   ;;  %v2723_v24 = vld [vmem:[%s3845_s4 + $0xf4] ss:$8 sps:$4 sm:$0xff]   ;;  %v2721_v25 = vld [vmem:[%s3845_s4 + $0xf0] ss:$8 sps:$4 sm:$0xff]  }
  0x49   : > { %v3196_v26 = vld [vmem:[%s3845_s4 + $0x194] ss:$8 sps:$4 sm:$0xff]   ;;  %v3201_v27 = vld [vmem:[%s3845_s4 + $0x190] ss:$8 sps:$4 sm:$0xff]   ;;  %v3209_v28 = vld [vmem:[%s3845_s4 + $0x1a4] ss:$8 sps:$4 sm:$0xff]  }
  0x4a   : > { %632 = vmatpush1.bf16.msra.mxu0 %v2638_v31  ;;  %735 = vmatpush1.bf16.msra.mxu1 %v2641_v32  ;;  %v3214_v29 = vld [vmem:[%s3845_s4 + $0x1a0] ss:$8 sps:$4 sm:$0xff]   ;;  %v3221_v30 = vld [vmem:[%s3845_s4 + $0x1b4] ss:$8 sps:$4 sm:$0xff]   ;;  %v3226_v31 = vld [vmem:[%s3845_s4 + $0x1b0] ss:$8 sps:$4 sm:$0xff]  }
  0x4b   : > { %1303 = vmatprep.subr.bf16.mxu0 %v2651_v33  ;;  %2482 = vmatprep.subr.bf16.mxu1 %v2997_v41  ;;  %v3233_v32 = vld [vmem:[%s3845_s4 + $0x1c4] ss:$8 sps:$4 sm:$0xff]   ;;  %v3238_v33 = vld [vmem:[%s3845_s4 + $0x1c0] ss:$8 sps:$4 sm:$0xff]  }
  0x4d   : > { %650 = vmatmul.mubr.bf16.vlgmr.msra.gmra.mrb[0].mxu0 %v2642_v34  ;;  %753 = vmatmul.mubr.bf16.vlgmr.msra.gmra.mrb[0].mxu1 %v2642_v34  ;;  %v3245_v34 = vld [vmem:[%s3845_s4 + $0x1d4] ss:$8 sps:$4 sm:$0xff]  }
  0x4e   : > { %659 = vmatprep.mubr.bf16.mxu0 %v2860_v0  ;;  %1304 = vmatpush1.bf16.msra.mxu0 %v2649_v35  ;;  %v3250_v35 = vld [vmem:[%s3845_s4 + $0x1d0] ss:$8 sps:$4 sm:$0xff]  }
  0x4f   : > { %1305 = vmatprep.subr.bf16.mxu0 %v2654_v36  ;;  %762 = vmatprep.mubr.bf16.mxu1 %v2860_v0  ;;  %v3257_v36 = vld [vmem:[%s3845_s4 + $0x1e4] ss:$8 sps:$4 sm:$0xff]  }
  0x50   : > { %2498 = vmatpush1.bf16.msra.mxu1 %v2992_v40 }
  0x51   : > { %2483 = vmatprep.subr.bf16.mxu1 %v3010_v44 }
  0x52   : > { %1306 = vmatpush1.bf16.msra.mxu0 %v2652_v37  ;;  %v3262_v37 = vld [vmem:[%s3845_s4 + $0x1e0] ss:$8 sps:$4 sm:$0xff]  }
  0x53   : > { %1307 = vmatprep.subr.bf16.mxu0 %v2657_v38  ;;  %v3269_v38 = vld [vmem:[%s3845_s4 + $0x1f4] ss:$8 sps:$4 sm:$0xff]  }
  0x54   : > { %2499 = vmatpush1.bf16.msra.mxu1 %v3018_v46 }
  0x55   : > { %660 = vmatmul.mubr.bf16.gmra.mrb[4].mxu0 %v2643_v39  ;;  %763 = vmatmul.mubr.bf16.gmra.mrb[4].mxu1 %v2643_v39  ;;  %v3274_v39 = vld [vmem:[%s3845_s4 + $0x1f0] ss:$8 sps:$4 sm:$0xff]  }
  0x56   : > { %669 = vmatprep.mubr.bf16.mxu0 %v2860_v0  ;;  %1308 = vmatpush1.bf16.msra.mxu0 %v2655_v42 }
  0x57   : > { %1309 = vmatprep.subr.bf16.mxu0 %v2660_v43  ;;  %772 = vmatprep.mubr.bf16.mxu1 %v2860_v0 }
  0x58   : > { %2484 = vmatprep.subr.bf16.mxu1 %v3027_v48 }
  0x59   : > { %2500 = vmatpush1.bf16.msra.mxu1 %v3036_v50 }
  0x5a   : > { %1310 = vmatpush1.bf16.msra.mxu0 %v2658_v45  ;;  %2485 = vmatprep.subr.bf16.mxu1 %v3048_v53  ;;  %v393_v45 = vld [vmem:[%s3844_s3] sm:$0xf] }
  0x5b   : > { %1311 = vmatprep.subr.bf16.mxu0 %v2663_v47 }
  0x5d   : > { %670 = vmatmul.mubr.bf16.gmra.mrb[8].mxu0 %v2644_v49  ;;  %773 = vmatmul.mubr.bf16.gmra.mrb[8].mxu1 %v2644_v49 }
  0x5e   : > { %679 = vmatprep.mubr.bf16.mxu0 %v2860_v0  ;;  %1312 = vmatpush1.bf16.msra.mxu0 %v2661_v51 }
  0x5f   : > { %1313 = vmatprep.subr.bf16.mxu0 %v2666_v52  ;;  %782 = vmatprep.mubr.bf16.mxu1 %v2860_v0 }
  0x60   : > { %2501 = vmatpush1.bf16.msra.mxu1 %v3057_v55 }
  0x61   : > { %2486 = vmatprep.subr.bf16.mxu1 %v3063_v56 }
  0x62   : > { %1314 = vmatpush1.bf16.msra.mxu0 %v2664_v54 }
  0x63   : > { %1315 = vmatprep.subr.bf16.mxu0 %v2669_v57 }
  0x64   : > { %2502 = vmatpush1.bf16.msra.mxu1 %v3078_v60 }
  0x65   : > { %680 = vmatmul.mubr.bf16.gmra.mrb[12].mxu0 %v2645_v58  ;;  %783 = vmatmul.mubr.bf16.gmra.mrb[12].mxu1 %v2645_v58 }
  0x66   : > { %689 = vmatprep.mubr.bf16.mxu0 %v2860_v0  ;;  %1316 = vmatpush1.bf16.msra.mxu0 %v2667_v59 }
  0x67   : > { %1317 = vmatprep.subr.bf16.mxu0 %v2675_v61  ;;  %792 = vmatprep.mubr.bf16.mxu1 %v2860_v0 }
  0x68   : > { %2487 = vmatprep.subr.bf16.mxu1 %v3092_v63 }
  0x69   : > { %2503 = vmatpush1.bf16.msra.mxu1 %v3087_v62 }
  0x6a   : > { %1318 = vmatpush1.bf16.msra.mxu0 %v2673_v1  ;;  %2488 = vmatprep.subr.bf16.mxu1 %v3100_v2 }
  0x6b   : > { %1319 = vmatprep.subr.bf16.mxu0 %v2681_v3 }
  0x6d   : > { %690 = vmatmul.mubr.bf16.gmra.mrb[16].mxu0 %v2646_v4  ;;  %2504 = vmatpush1.bf16.msra.mxu1 %v3111_v5 }
  0x6e   : > { %699 = vmatprep.mubr.bf16.mxu0 %v2860_v0  ;;  %1320 = vmatpush1.bf16.msra.mxu0 %v2679_v6 }
  0x6f   : > { %793 = vmatmul.mubr.bf16.gmra.mrb[16].mxu1 %v2646_v4  ;;  %1321 = vmatprep.subr.bf16.mxu0 %v2687_v7 }
  0x70   : > { %802 = vmatprep.mubr.bf16.mxu1 %v2860_v0 }
  0x72   : > { %1322 = vmatpush1.bf16.msra.mxu0 %v2685_v8 }
  0x73   : > { %1323 = vmatprep.subr.bf16.mxu0 %v2693_v9 }
  0x75   : > { %700 = vmatmul.mubr.bf16.gmra.mrb[20].mxu0 %v2647_v10 }
  0x76   : > { %709 = vmatprep.mubr.bf16.mxu0 %v2860_v0  ;;  %1324 = vmatpush1.bf16.msra.mxu0 %v2691_v11 }
  0x77   : > { %803 = vmatmul.mubr.bf16.gmra.mrb[20].mxu1 %v2647_v10  ;;  %1325 = vmatprep.subr.bf16.mxu0 %v2699_v12 }
  0x78   : > { %812 = vmatprep.mubr.bf16.mxu1 %v2860_v0  ;;  %v3160_v0 = vld [vmem:[%s3845_s4 + $0x174] ss:$8 sps:$4 sm:$0xff]  }
  0x79   : > { %2489 = vmatprep.subr.bf16.mxu1 %v3160_v0 }
  0x7a   : > { %1326 = vmatpush1.bf16.msra.mxu0 %v2697_v13  ;;  %2505 = vmatpush1.bf16.msra.mxu1 %v3165_v19 }
  0x7b   : > { %1327 = vmatprep.subr.bf16.mxu0 %v2705_v14  ;;  %2490 = vmatprep.subr.bf16.mxu1 %v3178_v22 }
  0x7d   : > { %710 = vmatmul.mubr.bf16.gmra.mrb[24].mxu0 %v2648_v15 }
  0x7e   : > { %1328 = vmatpush1.bf16.msra.mxu0 %v2703_v16  ;;  %2506 = vmatpush1.bf16.msra.mxu1 %v3183_v23 }
  0x7f   : > { %813 = vmatmul.mubr.bf16.gmra.mrb[24].mxu1 %v2648_v15  ;;  %1329 = vmatprep.subr.bf16.mxu0 %v2711_v17 }
  0x80   : > { %2491 = vmatprep.subr.bf16.mxu1 %v3196_v26 }
  0x82   : > { %1330 = vmatpush1.bf16.msra.mxu0 %v2709_v18  ;;  %2507 = vmatpush1.bf16.msra.mxu1 %v3201_v27 }
  0x83   : > { %1331 = vmatprep.subr.bf16.mxu0 %v2717_v20  ;;  %2492 = vmatprep.subr.bf16.mxu1 %v3209_v28 }
  0x86   : > { %1332 = vmatpush1.bf16.msra.mxu0 %v2715_v21  ;;  %2508 = vmatpush1.bf16.msra.mxu1 %v3214_v29 }
  0x87   : > { %1333 = vmatprep.subr.bf16.mxu0 %v2723_v24  ;;  %2493 = vmatprep.subr.bf16.mxu1 %v3221_v30 }
  0x8a   : > { %1334 = vmatpush1.bf16.msra.mxu0 %v2721_v25  ;;  %2509 = vmatpush1.bf16.msra.mxu1 %v3226_v31 }
  0x8b   : > { %1406 = vmatprep.subr.bf16.mxu0 %v2997_v41  ;;  %2494 = vmatprep.subr.bf16.mxu1 %v3233_v32  ;;  %v395_v41 = vlaneseq }
  0x8d   : > { %v3279_v42 = vshrl.u32 %v395_v41, 7 }
  0x8e   : > { %2510 = vmatpush1.bf16.msra.mxu1 %v3238_v33 }
  0x8f   : > { %2495 = vmatprep.subr.bf16.mxu1 %v3245_v34  ;;  %v397_v43 = vsub.s32 0, %v3279_v42  ;;  %v401_v47 = vsub.s32 1, %v3279_v42  ;;  %v405_v51 = vsub.s32 2, %v3279_v42  ;;  %v409_v54 = vsub.s32 3, %v3279_v42 }
  0x91   : > { %v3288_v49 = vrot.slane %v393_v45, %v397_v43  ;;  %v3293_v52 = vrot.slane %v393_v45, %v401_v47  ;;  %v3297_v61 = vrot.slane %v393_v45, %v405_v51  ;;  %v3300_v6 = vrot.slane %v393_v45, %v409_v54 }
  0x92   : > { %2511 = vmatpush1.bf16.msra.mxu1 %v3250_v35 }
  0x93   : > { %2496 = vmatprep.subr.bf16.mxu1 %v3257_v36 }
  0x96   : > { %2512 = vmatpush1.bf16.msra.mxu1 %v3262_v37 }
  0x97   : > { %2497 = vmatprep.subr.bf16.mxu1 %v3269_v38 }
  0x9a   : > { %2513 = vmatpush1.bf16.msra.mxu1 %v3274_v39 }
 0x120   : > { %v651_v57 = vpop.f32.mrb[0].mxu0  ;;  %v754_v4 = vpop.f32.mrb[0].mxu1 }
 0x121   : > { %v652_v58 = vadd.f32 %v651_v57, %v3288_v49  ;;  %v653_v59 = vpop.f32.mrb[1].mxu0  ;;  %v755_v9 = vadd.f32 %v754_v4, %v3297_v61  ;;  %v756_v10 = vpop.f32.mrb[1].mxu1 }
 0x122   : > { %v654_v1 = vadd.f32 %v653_v59, %v3293_v52  ;;  %v655_v3 = vpop.f32.mrb[2].mxu0  ;;  %v757_v12 = vadd.f32 %v756_v10, %v3300_v6  ;;  %v758_v13 = vpop.f32.mrb[2].mxu1 }
 0x123   : > { %v656_v7 = vadd.f32 %v655_v3, %v3288_v49  ;;  %v657_v8 = vpop.f32.mrb[3].mxu0  ;;  %v823_v14 = vmax.f32 %v652_v58, 0.0  ;;  %v825_v16 = vmax.f32 %v755_v9, 0.0  ;;  %v759_v17 = vadd.f32 %v758_v13, %v3297_v61  ;;  %v760_v18 = vpop.f32.mrb[3].mxu1 }
 0x124   : > { %v658_v11 = vadd.f32 %v657_v8, %v3293_v52  ;;  %v824_v20 = vmax.f32 %v654_v1, 0.0  ;;  %v826_v24 = vmax.f32 %v757_v12, 0.0  ;;  %v761_v25 = vadd.f32 %v760_v18, %v3300_v6 }
 0x125   : > { %v827_v15 = vmax.f32 %v656_v7, 0.0  ;;  %v829_v51 = vmax.f32 %v759_v17, 0.0 }
 0x126   : > { %v828_v21 = vmax.f32 %v658_v11, 0.0  ;;  %v830_v59 = vmax.f32 %v761_v25, 0.0 }
 0x127   : > { %v879_v45 = vpack.c.bf16 %v827_v15, %v823_v14  ;;  %v3309_v8 = vpack.c.bf16 %v829_v51, %v825_v16 }
 0x128   : > { %v880_v54 = vpack.c.bf16 %v828_v21, %v824_v20  ;;  %v661_v57 = vpop.f32.mrb[4].mxu0  ;;  %v3312_v9 = vpack.c.bf16 %v830_v59, %v826_v24  ;;  %v764_v1 = vpop.f32.mrb[4].mxu1 }
 0x129   : > { %v662_v3 = vadd.f32 %v661_v57, %v3288_v49  ;;  %v663_v4 = vpop.f32.mrb[5].mxu0  ;;  %v765_v13 = vadd.f32 %v764_v1, %v3297_v61  ;;  %v766_v14 = vpop.f32.mrb[5].mxu1 }
 0x12a   : > { %v664_v58 = vadd.f32 %v663_v4, %v3293_v52  ;;  %v665_v7 = vpop.f32.mrb[6].mxu0  ;;  %1335 = vmatprep.mubr.bf16.mxu0 %v880_v54  ;;  %v767_v16 = vadd.f32 %v766_v14, %v3300_v6  ;;  %v768_v18 = vpop.f32.mrb[6].mxu1 }
 0x12b   : > { %v831_v10 = vmax.f32 %v662_v3, 0.0  ;;  %v666_v11 = vadd.f32 %v665_v7, %v3288_v49  ;;  %v667_v12 = vpop.f32.mrb[7].mxu0  ;;  %1336 = vmatmul.mubr.bf16.vlgmr.msra.gmra.mrb[28].mxu0 %v879_v45  ;;  %v833_v21 = vmax.f32 %v765_v13, 0.0  ;;  %v769_v24 = vadd.f32 %v768_v18, %v3297_v61  ;;  %v770_v25 = vpop.f32.mrb[7].mxu1 }
 0x12c   : > { %v832_v15 = vmax.f32 %v664_v58, 0.0  ;;  %v668_v17 = vadd.f32 %v667_v12, %v3293_v52  ;;  %1407 = vmatpush1.bf16.msra.mxu0 %v2992_v40  ;;  %v834_v45 = vmax.f32 %v767_v16, 0.0  ;;  %v771_v54 = vadd.f32 %v770_v25, %v3300_v6 }
 0x12d   : > { %v835_v20 = vmax.f32 %v666_v11, 0.0  ;;  %1408 = vmatprep.subr.bf16.mxu0 %v3010_v44  ;;  %v837_v59 = vmax.f32 %v769_v24, 0.0 }
 0x12e   : > { %v836_v51 = vmax.f32 %v668_v17, 0.0  ;;  %v838_v4 = vmax.f32 %v771_v54, 0.0 }
 0x12f   : > { %v883_v57 = vpack.c.bf16 %v835_v20, %v831_v10  ;;  %v3325_v44 = vpack.c.bf16 %v837_v59, %v833_v21 }
 0x130   : > { %v884_v3 = vpack.c.bf16 %v836_v51, %v832_v15  ;;  %1409 = vmatpush1.bf16.msra.mxu0 %v3018_v46  ;;  %v671_v40 = vpop.f32.mrb[8].mxu0  ;;  %v3328_v12 = vpack.c.bf16 %v838_v4, %v834_v45  ;;  %v774_v10 = vpop.f32.mrb[8].mxu1 }
 0x131   : > { %v672_v58 = vadd.f32 %v671_v40, %v3288_v49  ;;  %v673_v7 = vpop.f32.mrb[9].mxu0  ;;  %1410 = vmatprep.subr.bf16.mxu0 %v3027_v48  ;;  %v775_v15 = vadd.f32 %v774_v10, %v3297_v61  ;;  %v776_v17 = vpop.f32.mrb[9].mxu1 }
 0x132   : > { %v674_v1 = vadd.f32 %v673_v7, %v3293_v52  ;;  %v675_v11 = vpop.f32.mrb[10].mxu0  ;;  %1345 = vmatprep.mubr.bf16.mxu0 %v884_v3  ;;  %v777_v18 = vadd.f32 %v776_v17, %v3300_v6  ;;  %v778_v20 = vpop.f32.mrb[10].mxu1 }
 0x133   : > { %v839_v13 = vmax.f32 %v672_v58, 0.0  ;;  %v676_v14 = vadd.f32 %v675_v11, %v3288_v49  ;;  %v677_v46 = vpop.f32.mrb[11].mxu0  ;;  %1346 = vmatmul.mubr.bf16.gmra.mrb[32].mxu0 %v883_v57  ;;  %v841_v24 = vmax.f32 %v775_v15, 0.0  ;;  %v779_v25 = vadd.f32 %v778_v20, %v3297_v61  ;;  %v780_v51 = vpop.f32.mrb[11].mxu1 }
 0x134   : > { %v840_v16 = vmax.f32 %v674_v1, 0.0  ;;  %v678_v48 = vadd.f32 %v677_v46, %v3293_v52  ;;  %1411 = vmatpush1.bf16.msra.mxu0 %v3036_v50  ;;  %v842_v54 = vmax.f32 %v777_v18, 0.0  ;;  %v781_v57 = vadd.f32 %v780_v51, %v3300_v6 }
 0x135   : > { %v843_v21 = vmax.f32 %v676_v14, 0.0  ;;  %1412 = vmatprep.subr.bf16.mxu0 %v3048_v53  ;;  %v845_v3 = vmax.f32 %v779_v25, 0.0 }
 0x136   : > { %v844_v45 = vmax.f32 %v678_v48, 0.0  ;;  %v846_v4 = vmax.f32 %v781_v57, 0.0 }
 0x137   : > { %v887_v59 = vpack.c.bf16 %v843_v21, %v839_v13  ;;  %v3340_v7 = vpack.c.bf16 %v845_v3, %v841_v24 }
 0x138   : > { %v888_v40 = vpack.c.bf16 %v844_v45, %v840_v16  ;;  %1413 = vmatpush1.bf16.msra.mxu0 %v3057_v55  ;;  %v681_v50 = vpop.f32.mrb[12].mxu0  ;;  %v3344_v11 = vpack.c.bf16 %v846_v4, %v842_v54  ;;  %v784_v14 = vpop.f32.mrb[12].mxu1 }
 0x139   : > { %v682_v58 = vadd.f32 %v681_v50, %v3288_v49  ;;  %v683_v1 = vpop.f32.mrb[13].mxu0  ;;  %1414 = vmatprep.subr.bf16.mxu0 %v3063_v56  ;;  %v785_v55 = vadd.f32 %v784_v14, %v3297_v61  ;;  %v786_v17 = vpop.f32.mrb[13].mxu1 }
 0x13a   : > { %v684_v53 = vadd.f32 %v683_v1, %v3293_v52  ;;  %v685_v10 = vpop.f32.mrb[14].mxu0  ;;  %1355 = vmatprep.mubr.bf16.mxu0 %v888_v40  ;;  %v787_v56 = vadd.f32 %v786_v17, %v3300_v6  ;;  %v788_v18 = vpop.f32.mrb[14].mxu1 }
 0x13b   : > { %v847_v13 = vmax.f32 %v682_v58, 0.0  ;;  %v686_v46 = vadd.f32 %v685_v10, %v3288_v49  ;;  %v687_v15 = vpop.f32.mrb[15].mxu0  ;;  %1356 = vmatmul.mubr.bf16.gmra.mrb[36].mxu0 %v887_v59  ;;  %v849_v21 = vmax.f32 %v785_v55, 0.0  ;;  %v789_v24 = vadd.f32 %v788_v18, %v3297_v61  ;;  %v790_v25 = vpop.f32.mrb[15].mxu1 }
 0x13c   : > { %v848_v16 = vmax.f32 %v684_v53, 0.0  ;;  %v688_v48 = vadd.f32 %v687_v15, %v3293_v52  ;;  %1415 = vmatpush1.bf16.msra.mxu0 %v3078_v60  ;;  %v850_v45 = vmax.f32 %v787_v56, 0.0  ;;  %v791_v54 = vadd.f32 %v790_v25, %v3300_v6 }
 0x13d   : > { %v851_v20 = vmax.f32 %v686_v46, 0.0  ;;  %1416 = vmatprep.subr.bf16.mxu0 %v3092_v63  ;;  %v853_v59 = vmax.f32 %v789_v24, 0.0 }
 0x13e   : > { %v852_v51 = vmax.f32 %v688_v48, 0.0  ;;  %v854_v40 = vmax.f32 %v791_v54, 0.0 }
 0x13f   : > { %v891_v57 = vpack.c.bf16 %v851_v20, %v847_v13  ;;  %v893_v60 = vpack.c.bf16 %v853_v59, %v849_v21 }
 0x140   : > { %v892_v3 = vpack.c.bf16 %v852_v51, %v848_v16  ;;  %1417 = vmatpush1.bf16.msra.mxu0 %v3087_v62  ;;  %v691_v50 = vpop.f32.mrb[16].mxu0  ;;  %v894_v1 = vpack.c.bf16 %v854_v40, %v850_v45 }
 0x141   : > { %v692_v4 = vadd.f32 %v691_v50, %v3288_v49  ;;  %v693_v58 = vpop.f32.mrb[17].mxu0  ;;  %1418 = vmatprep.subr.bf16.mxu0 %v3100_v2 }
 0x142   : > { %v694_v63 = vadd.f32 %v693_v58, %v3293_v52  ;;  %v695_v53 = vpop.f32.mrb[18].mxu0  ;;  %v794_v10 = vpop.f32.mrb[16].mxu1  ;;  %1365 = vmatprep.mubr.bf16.mxu0 %v892_v3  ;;  %1468 = vmatprep.mubr.bf16.mxu1 %v894_v1 }
 0x143   : > { %v855_v14 = vmax.f32 %v692_v4, 0.0  ;;  %v696_v13 = vadd.f32 %v695_v53, %v3288_v49  ;;  %v795_v46 = vadd.f32 %v794_v10, %v3297_v61  ;;  %v697_v55 = vpop.f32.mrb[19].mxu0  ;;  %v796_v62 = vpop.f32.mrb[17].mxu1  ;;  %1366 = vmatmul.mubr.bf16.gmra.mrb[40].mxu0 %v891_v57  ;;  %1469 = vmatmul.mubr.bf16.vlgmr.msra.gmra.mrb[28].mxu1 %v893_v60 }
 0x144   : > { %v856_v15 = vmax.f32 %v694_v63, 0.0  ;;  %v698_v17 = vadd.f32 %v697_v55, %v3293_v52  ;;  %v797_v16 = vadd.f32 %v796_v62, %v3300_v6  ;;  %1419 = vmatpush1.bf16.msra.mxu0 %v3111_v5  ;;  %v798_v2 = vpop.f32.mrb[18].mxu1 }
 0x145   : > { %v859_v48 = vmax.f32 %v696_v13, 0.0  ;;  %v857_v56 = vmax.f32 %v795_v46, 0.0  ;;  %v799_v18 = vadd.f32 %v798_v2, %v3297_v61  ;;  %v800_v20 = vpop.f32.mrb[19].mxu1  ;;  %1420 = vmatprep.subr.bf16.mxu0 %v3160_v0 }
 0x146   : > { %v860_v21 = vmax.f32 %v698_v17, 0.0  ;;  %v858_v24 = vmax.f32 %v797_v16, 0.0  ;;  %v801_v25 = vadd.f32 %v800_v20, %v3300_v6 }
 0x147   : > { %v895_v51 = vpack.c.bf16 %v859_v48, %v855_v14  ;;  %v861_v45 = vmax.f32 %v799_v18, 0.0 }
 0x148   : > { %v896_v54 = vpack.c.bf16 %v860_v21, %v856_v15  ;;  %v862_v57 = vmax.f32 %v801_v25, 0.0  ;;  %1421 = vmatpush1.bf16.msra.mxu0 %v3165_v19  ;;  %v701_v5 = vpop.f32.mrb[20].mxu0 }
 0x149   : > { %v897_v59 = vpack.c.bf16 %v861_v45, %v857_v56  ;;  %v702_v3 = vadd.f32 %v701_v5, %v3288_v49  ;;  %v703_v40 = vpop.f32.mrb[21].mxu0  ;;  %1422 = vmatprep.subr.bf16.mxu0 %v3178_v22 }
 0x14a   : > { %v898_v50 = vpack.c.bf16 %v862_v57, %v858_v24  ;;  %v704_v0 = vadd.f32 %v703_v40, %v3293_v52  ;;  %v705_v60 = vpop.f32.mrb[22].mxu0  ;;  %v804_v4 = vpop.f32.mrb[20].mxu1  ;;  %1375 = vmatprep.mubr.bf16.mxu0 %v896_v54 }
 0x14b   : > { %v863_v58 = vmax.f32 %v702_v3, 0.0  ;;  %v706_v1 = vadd.f32 %v705_v60, %v3288_v49  ;;  %v805_v63 = vadd.f32 %v804_v4, %v3297_v61  ;;  %v707_v53 = vpop.f32.mrb[23].mxu0  ;;  %v806_v19 = vpop.f32.mrb[21].mxu1  ;;  %1376 = vmatmul.mubr.bf16.gmra.mrb[44].mxu0 %v895_v51 }
 0x14c   : > { %v864_v10 = vmax.f32 %v704_v0, 0.0  ;;  %v708_v14 = vadd.f32 %v707_v53, %v3293_v52  ;;  %v807_v13 = vadd.f32 %v806_v19, %v3300_v6  ;;  %1423 = vmatpush1.bf16.msra.mxu0 %v3183_v23  ;;  %v808_v22 = vpop.f32.mrb[22].mxu1  ;;  %1478 = vmatprep.mubr.bf16.mxu1 %v898_v50 }
 0x14d   : > { %v867_v46 = vmax.f32 %v706_v1, 0.0  ;;  %v865_v55 = vmax.f32 %v805_v63, 0.0  ;;  %v809_v62 = vadd.f32 %v808_v22, %v3297_v61  ;;  %v810_v15 = vpop.f32.mrb[23].mxu1  ;;  %1479 = vmatmul.mubr.bf16.gmra.mrb[32].mxu1 %v897_v59  ;;  %1424 = vmatprep.subr.bf16.mxu0 %v3196_v26  ;;  %v1934_v22 = vld [vmem:[%s3457_s26 + $0x10] sm:$0xff] }
 0x14e   : > { %v868_v17 = vmax.f32 %v708_v14, 0.0  ;;  %v866_v16 = vmax.f32 %v807_v13, 0.0  ;;  %v811_v2 = vadd.f32 %v810_v15, %v3300_v6  ;;  %v1936_v15 = vld [vmem:[%s3457_s26 + $0x20] sm:$0xff] }
 0x14f   : > { %v899_v48 = vpack.c.bf16 %v867_v46, %v863_v58  ;;  %v869_v56 = vmax.f32 %v809_v62, 0.0  ;;  %v1941_v46 = vld [vmem:[%s3457_s26 + $0x48] sm:$0xff]  ;;  %v1943_v62 = vld [vmem:[%s3457_s26 + $0x58] sm:$0xff] }
 0x150   : > { %v900_v18 = vpack.c.bf16 %v868_v17, %v864_v10  ;;  %v870_v20 = vmax.f32 %v811_v2, 0.0  ;;  %1425 = vmatpush1.bf16.msra.mxu0 %v3201_v27  ;;  %v711_v23 = vpop.f32.mrb[24].mxu0  ;;  %v1937_v17 = vld [vmem:[%s3457_s26 + $0x28] sm:$0xff]  ;;  %v971_v2 = vld [vmem:[%s3846_s5] sm:$0x3] }
 0x151   : > { %v901_v21 = vpack.c.bf16 %v869_v56, %v865_v55  ;;  %v712_v24 = vadd.f32 %v711_v23, %v3288_v49  ;;  %v713_v25 = vpop.f32.mrb[25].mxu0  ;;  %1426 = vmatprep.subr.bf16.mxu0 %v3209_v28  ;;  %v1935_v55 = vld [vmem:[%s3457_s26 + $0x18] sm:$0xff]  ;;  %v3474_v56 = vrot.slane %v971_v2, %v397_v43 }
 0x152   : > { %v902_v51 = vpack.c.bf16 %v870_v20, %v866_v16  ;;  %v714_v26 = vadd.f32 %v713_v25, %v3293_v52  ;;  %v715_v45 = vpop.f32.mrb[26].mxu0  ;;  %v814_v54 = vpop.f32.mrb[24].mxu1  ;;  %1385 = vmatprep.mubr.bf16.mxu0 %v900_v18  ;;  %v1938_v16 = vld [vmem:[%s3457_s26 + $0x30] sm:$0xff]  ;;  %v3478_v18 = vrot.slane %v971_v2, %v401_v47  ;;  %v1940_v20 = vld [vmem:[%s3457_s26 + $0x40] sm:$0xff] }
 0x153   : > { %v871_v57 = vmax.f32 %v712_v24, 0.0  ;;  %v716_v5 = vadd.f32 %v715_v45, %v3288_v49  ;;  %v815_v59 = vadd.f32 %v814_v54, %v3297_v61  ;;  %v717_v3 = vpop.f32.mrb[27].mxu0  ;;  %v816_v27 = vpop.f32.mrb[25].mxu1  ;;  %1386 = vmatmul.mubr.bf16.gmra.mrb[48].mxu0 %v899_v48  ;;  %v1939_v48 = vld [vmem:[%s3457_s26 + $0x38] sm:$0xff] }
 0x154   : > { %v872_v40 = vmax.f32 %v714_v26, 0.0  ;;  %v718_v50 = vadd.f32 %v717_v3, %v3293_v52  ;;  %v817_v0 = vadd.f32 %v816_v27, %v3300_v6  ;;  %1427 = vmatpush1.bf16.msra.mxu0 %v3214_v29  ;;  %v818_v28 = vpop.f32.mrb[26].mxu1  ;;  %1488 = vmatprep.mubr.bf16.mxu1 %v902_v51 }
 0x155   : > { %v875_v60 = vmax.f32 %v716_v5, 0.0  ;;  %v873_v4 = vmax.f32 %v815_v59, 0.0  ;;  %v819_v58 = vadd.f32 %v818_v28, %v3297_v61  ;;  %v820_v1 = vpop.f32.mrb[27].mxu1  ;;  %1489 = vmatmul.mubr.bf16.gmra.mrb[36].mxu1 %v901_v21  ;;  %1428 = vmatprep.subr.bf16.mxu0 %v3221_v30  ;;  %v2745_v30 = vld [vmem:[%s3847_s6 + $0x40] sm:$0xff]   ;;  %v2755_v61 = vld [vmem:[%s3847_s6 + $0x68] sm:$0xff]   ;;  %v1942_v5 = vld [vmem:[%s3457_s26 + $0x50] sm:$0xff] }
 0x156   : > { %v876_v49 = vmax.f32 %v718_v50, 0.0  ;;  %v874_v63 = vmax.f32 %v817_v0, 0.0  ;;  %v821_v53 = vadd.f32 %v820_v1, %v3300_v6  ;;  %2424 = vmatprep.subr.bf16.mxu1 %v2745_v30  ;;  %v2756_v6 = vld [vmem:[%s3847_s6 + $0x28] sm:$0xff]  }
 0x157   : > { %v903_v19 = vpack.c.bf16 %v875_v60, %v871_v57  ;;  %v877_v52 = vmax.f32 %v819_v58, 0.0 }
 0x158   : > { %v904_v10 = vpack.c.bf16 %v876_v49, %v872_v40  ;;  %v878_v14 = vmax.f32 %v821_v53, 0.0  ;;  %1429 = vmatpush1.bf16.msra.mxu0 %v3226_v31  ;;  %v2746_v31 = vld [vmem:[%s3847_s6] sm:$0xff]  }
 0x159   : > { %v905_v29 = vpack.c.bf16 %v877_v52, %v873_v4  ;;  %1430 = vmatprep.subr.bf16.mxu0 %v3233_v32  ;;  %2425 = vmatpush3.bf16.msra.mxu1 %v2746_v31  ;;  %v2747_v32 = vld [vmem:[%s3847_s6 + $0x48] sm:$0xff]  }
 0x15a   : > { %v906_v13 = vpack.c.bf16 %v878_v14, %v874_v63  ;;  %1395 = vmatprep.mubr.bf16.mxu0 %v904_v10  ;;  %2426 = vmatprep.subr.bf16.mxu1 %v2747_v32 }
 0x15b   : > { %1396 = vmatmul.mubr.bf16.gmra.mrb[52].mxu0 %v903_v19 }
 0x15c   : > { %1431 = vmatpush1.bf16.msra.mxu0 %v3238_v33  ;;  %1498 = vmatprep.mubr.bf16.mxu1 %v906_v13  ;;  %v2748_v33 = vld [vmem:[%s3847_s6 + $0x8] sm:$0xff]  }
 0x15d   : > { %1499 = vmatmul.mubr.bf16.gmra.mrb[40].mxu1 %v905_v29  ;;  %1432 = vmatprep.subr.bf16.mxu0 %v3245_v34  ;;  %v2749_v34 = vld [vmem:[%s3847_s6 + $0x50] sm:$0xff]  }
 0x15e   : > { %1438 = vmatprep.mubr.bf16.mxu0 %v3312_v9  ;;  %2427 = vmatpush3.bf16.msra.mxu1 %v2748_v33  ;;  %v2758_v9 = vld [vmem:[%s3847_s6 + $0x30] sm:$0xff]  }
 0x15f   : > { %2428 = vmatprep.subr.bf16.mxu1 %v2749_v34 }
 0x160   : > { %1433 = vmatpush1.bf16.msra.mxu0 %v3250_v35  ;;  %v2750_v35 = vld [vmem:[%s3847_s6 + $0x10] sm:$0xff]  }
 0x161   : > { %1434 = vmatprep.subr.bf16.mxu0 %v3257_v36  ;;  %v2751_v36 = vld [vmem:[%s3847_s6 + $0x58] sm:$0xff]  }
 0x162   : > { %2429 = vmatpush3.bf16.msra.mxu1 %v2750_v35 }
 0x163   : > { %2430 = vmatprep.subr.bf16.mxu1 %v2751_v36 }
 0x164   : > { %1435 = vmatpush1.bf16.msra.mxu0 %v3262_v37  ;;  %v2752_v37 = vld [vmem:[%s3847_s6 + $0x18] sm:$0xff]  }
 0x165   : > { %1436 = vmatprep.subr.bf16.mxu0 %v3269_v38  ;;  %v2753_v38 = vld [vmem:[%s3847_s6 + $0x60] sm:$0xff]  }
 0x166   : > { %2431 = vmatpush3.bf16.msra.mxu1 %v2752_v37 }
 0x167   : > { %2432 = vmatprep.subr.bf16.mxu1 %v2753_v38 }
 0x168   : > { %1437 = vmatpush1.bf16.msra.mxu0 %v3274_v39  ;;  %v2754_v39 = vld [vmem:[%s3847_s6 + $0x20] sm:$0xff]  }
 0x16a   : > { %2433 = vmatpush3.bf16.msra.mxu1 %v2754_v39 }
 0x16b   : > { %1439 = vmatmul.mubr.bf16.vlgmr.msra.gmra.mrb[28].mxu0 %v3309_v8  ;;  %2434 = vmatprep.subr.bf16.mxu1 %v2755_v61  ;;  %v2757_v8 = vld [vmem:[%s3847_s6 + $0x70] sm:$0xff]  }
 0x16c   : > { %1448 = vmatprep.mubr.bf16.mxu0 %v3328_v12  ;;  %v2760_v12 = vld [vmem:[%s3847_s6 + $0x38] sm:$0xff]  }
 0x16e   : > { %2435 = vmatpush3.bf16.msra.mxu1 %v2756_v6 }
 0x16f   : > { %2436 = vmatprep.subr.bf16.mxu1 %v2757_v8 }
 0x172   : > { %2437 = vmatpush3.bf16.msra.mxu1 %v2758_v9 }
 0x173   : > { %1449 = vmatmul.mubr.bf16.gmra.mrb[32].mxu0 %v3325_v44  ;;  %v2759_v44 = vld [vmem:[%s3847_s6 + $0x78] sm:$0xff]  }
 0x174   : > { %1458 = vmatprep.mubr.bf16.mxu0 %v3344_v11  ;;  %2438 = vmatprep.subr.bf16.mxu1 %v2759_v44  ;;  %v1933_v11 = vld [vmem:[%s3457_s26 + $0x8] sm:$0xff] }
 0x175   : > { %1950 = vperm.xlu1 %2593, %v1933_v11  }
 0x176   : > { %2439 = vmatpush3.bf16.msra.mxu1 %v2760_v12 }
 0x179   : > { %1953 = vperm.xlu1 %2593, %v1934_v22  }
 0x17b   : > { %1459 = vmatmul.mubr.bf16.gmra.mrb[36].mxu0 %v3340_v7  ;;  %v1932_v7 = vld [vmem:[%s3457_s26] sm:$0xff] }
 0x17c   : > { %1947 = vperm.xlu0 %2592, %v1932_v7  }
 0x17d   : > { %1956 = vperm.xlu1 %2593, %v1935_v55  }
 0x180   : > { %1974 = vperm.xlu0 %2592, %v1941_v46  }
 0x181   : > { %1959 = vperm.xlu1 %2593, %v1936_v15  }
 0x184   : > { %1980 = vperm.xlu0 %2592, %v1943_v62  }
 0x185   : > { %1962 = vperm.xlu1 %2593, %v1937_v17  }
 0x189   : > { %1965 = vperm.xlu1 %2593, %v1938_v16  }
 0x18d   : > { %1968 = vperm.xlu1 %2593, %v1939_v48  }
 0x191   : > { %1971 = vperm.xlu1 %2593, %v1940_v20  }
 0x195   : > { %1977 = vperm.xlu1 %2593, %v1942_v5  }
 0x216   : > { %v1367_v23 = vpop.f32.mrb[40].mxu0  ;;  %v1470_v26 = vpop.f32.mrb[28].mxu1 }
 0x217   : > { %v1368_v21 = vadd.f32 %v1367_v23, %v3474_v56  ;;  %v1369_v24 = vpop.f32.mrb[41].mxu0  ;;  %v1472_v57 = vpop.f32.mrb[29].mxu1 }
 0x218   : > { %v1370_v25 = vadd.f32 %v1369_v24, %v3478_v18  ;;  %v1371_v51 = vpop.f32.mrb[42].mxu0  ;;  %v1474_v59 = vpop.f32.mrb[30].mxu1 }
 0x219   : > { %v1372_v45 = vadd.f32 %v1371_v51, %v3474_v56  ;;  %v1471_v54 = vadd.f32 %v1470_v26, %v1368_v21  ;;  %v1373_v43 = vpop.f32.mrb[43].mxu0  ;;  %v1476_v40 = vpop.f32.mrb[31].mxu1 }
 0x21a   : > { %v1374_v42 = vadd.f32 %v1373_v43, %v3478_v18  ;;  %v1473_v47 = vadd.f32 %v1472_v57, %v1370_v25 }
 0x21b   : > { %v1521_v3 = vmax.f32 %v1471_v54, 0.0  ;;  %v1475_v27 = vadd.f32 %v1474_v59, %v1372_v45 }
 0x21c   : > { %v1522_v50 = vmax.f32 %v1473_v47, 0.0  ;;  %v1477_v0 = vadd.f32 %v1476_v40, %v1374_v42 }
 0x21d   : > { %v1523_v28 = vmax.f32 %v1475_v27, 0.0 }
 0x21e   : > { %v1524_v60 = vmax.f32 %v1477_v0, 0.0  ;;  %v1377_v4 = vpop.f32.mrb[44].mxu0 }
 0x21f   : > { %v3486_v58 = vpack.c.bf16 %v1523_v28, %v1521_v3  ;;  %v1378_v1 = vadd.f32 %v1377_v4, %v3474_v56  ;;  %v1379_v49 = vpop.f32.mrb[45].mxu0 }
 0x220   : > { %v3489_v63 = vpack.c.bf16 %v1524_v60, %v1522_v50  ;;  %v1380_v53 = vadd.f32 %v1379_v49, %v3478_v18  ;;  %v1381_v19 = vpop.f32.mrb[46].mxu0  ;;  %v1480_v52 = vpop.f32.mrb[32].mxu1 }
 0x221   : > { %v1382_v10 = vadd.f32 %v1381_v19, %v3474_v56  ;;  %v1481_v14 = vadd.f32 %v1480_v52, %v1378_v1  ;;  %v1383_v29 = vpop.f32.mrb[47].mxu0  ;;  %v1482_v13 = vpop.f32.mrb[33].mxu1 }
 0x222   : > { %v1384_v30 = vadd.f32 %v1383_v29, %v3478_v18  ;;  %v1483_v31 = vadd.f32 %v1482_v13, %v1380_v53  ;;  %v1484_v32 = vpop.f32.mrb[34].mxu1 }
 0x223   : > { %v1525_v33 = vmax.f32 %v1481_v14, 0.0  ;;  %v1485_v34 = vadd.f32 %v1484_v32, %v1382_v10  ;;  %v1486_v35 = vpop.f32.mrb[35].mxu1 }
 0x224   : > { %v1526_v36 = vmax.f32 %v1483_v31, 0.0  ;;  %v1487_v37 = vadd.f32 %v1486_v35, %v1384_v30 }
 0x225   : > { %v1527_v38 = vmax.f32 %v1485_v34, 0.0 }
 0x226   : > { %v1528_v39 = vmax.f32 %v1487_v37, 0.0  ;;  %v1387_v61 = vpop.f32.mrb[48].mxu0 }
 0x227   : > { %v3494_v6 = vpack.c.bf16 %v1527_v38, %v1525_v33  ;;  %v1388_v8 = vadd.f32 %v1387_v61, %v3474_v56  ;;  %v1389_v9 = vpop.f32.mrb[49].mxu0 }
 0x228   : > { %v3497_v44 = vpack.c.bf16 %v1528_v39, %v1526_v36  ;;  %v1390_v12 = vadd.f32 %v1389_v9, %v3478_v18  ;;  %v1391_v7 = vpop.f32.mrb[50].mxu0  ;;  %v1490_v11 = vpop.f32.mrb[36].mxu1 }
 0x229   : > { %v1392_v22 = vadd.f32 %v1391_v7, %v3474_v56  ;;  %v1491_v46 = vadd.f32 %v1490_v11, %v1388_v8  ;;  %v1393_v55 = vpop.f32.mrb[51].mxu0  ;;  %v1492_v62 = vpop.f32.mrb[37].mxu1 }
 0x22a   : > { %v1394_v15 = vadd.f32 %v1393_v55, %v3478_v18  ;;  %v1493_v17 = vadd.f32 %v1492_v62, %v1390_v12  ;;  %v1494_v16 = vpop.f32.mrb[38].mxu1 }
 0x22b   : > { %v1529_v2 = vmax.f32 %v1491_v46, 0.0  ;;  %v1495_v48 = vadd.f32 %v1494_v16, %v1392_v22  ;;  %v1496_v20 = vpop.f32.mrb[39].mxu1 }
 0x22c   : > { %v1530_v23 = vmax.f32 %v1493_v17, 0.0  ;;  %v1497_v21 = vadd.f32 %v1496_v20, %v1394_v15 }
 0x22d   : > { %v1531_v24 = vmax.f32 %v1495_v48, 0.0 }
 0x22e   : > { %v1532_v25 = vmax.f32 %v1497_v21, 0.0  ;;  %v1397_v51 = vpop.f32.mrb[52].mxu0 }
 0x22f   : > { %v3502_v26 = vpack.c.bf16 %v1531_v24, %v1529_v2  ;;  %v1398_v45 = vadd.f32 %v1397_v51, %v3474_v56  ;;  %v1399_v54 = vpop.f32.mrb[53].mxu0 }
 0x230   : > { %v3505_v43 = vpack.c.bf16 %v1532_v25, %v1530_v23  ;;  %v1400_v57 = vadd.f32 %v1399_v54, %v3478_v18  ;;  %v1401_v5 = vpop.f32.mrb[54].mxu0  ;;  %v1500_v42 = vpop.f32.mrb[40].mxu1 }
 0x231   : > { %v1402_v47 = vadd.f32 %v1401_v5, %v3474_v56  ;;  %v1501_v59 = vadd.f32 %v1500_v42, %v1398_v45  ;;  %v1403_v3 = vpop.f32.mrb[55].mxu0  ;;  %v1502_v27 = vpop.f32.mrb[41].mxu1 }
 0x232   : > { %v1404_v40 = vadd.f32 %v1403_v3, %v3478_v18  ;;  %v1503_v50 = vadd.f32 %v1502_v27, %v1400_v57  ;;  %v1504_v0 = vpop.f32.mrb[42].mxu1 }
 0x233   : > { %v1533_v28 = vmax.f32 %v1501_v59, 0.0  ;;  %v1505_v60 = vadd.f32 %v1504_v0, %v1402_v47  ;;  %v1506_v4 = vpop.f32.mrb[43].mxu1 }
 0x234   : > { %v1534_v1 = vmax.f32 %v1503_v50, 0.0  ;;  %v1507_v49 = vadd.f32 %v1506_v4, %v1404_v40 }
 0x235   : > { %v1535_v53 = vmax.f32 %v1505_v60, 0.0 }
 0x236   : > { %v1536_v19 = vmax.f32 %v1507_v49, 0.0 }
 0x237   : > { %v1549_v52 = vpack.c.bf16 %v1535_v53, %v1533_v28 }
 0x238   : > { %v1550_v10 = vpack.c.bf16 %v1536_v19, %v1534_v1 }
 0x23e   : > { %v1440_v14 = vpop.f32.mrb[28].mxu0 }
 0x23f   : > { %v2514_v29 = vadd.f32 %v1440_v14, %v3474_v56  ;;  %v1442_v13 = vpop.f32.mrb[29].mxu0 }
 0x240   : > { %v2515_v30 = vadd.f32 %v1442_v13, %v3478_v18  ;;  %v1444_v31 = vpop.f32.mrb[30].mxu0 }
 0x241   : > { %v2516_v32 = vadd.f32 %v1444_v31, %v3474_v56  ;;  %v1446_v33 = vpop.f32.mrb[31].mxu0  ;;  %v1509_v35 = vmax.f32 %v2514_v29, 0.0 }
 0x242   : > { %v2517_v34 = vadd.f32 %v1446_v33, %v3478_v18  ;;  %v1510_v37 = vmax.f32 %v2515_v30, 0.0 }
 0x243   : > { %v1511_v36 = vmax.f32 %v2516_v32, 0.0 }
 0x244   : > { %v1512_v38 = vmax.f32 %v2517_v34, 0.0 }
 0x245   : > { %v1537_v39 = vpack.c.bf16 %v1511_v36, %v1509_v35 }
 0x246   : > { %v1538_v61 = vpack.c.bf16 %v1512_v38, %v1510_v37  ;;  %v1450_v8 = vpop.f32.mrb[32].mxu0 }
 0x247   : > { %v2518_v9 = vadd.f32 %v1450_v8, %v3474_v56  ;;  %v1452_v12 = vpop.f32.mrb[33].mxu0 }
 0x248   : > { %v2519_v7 = vadd.f32 %v1452_v12, %v3478_v18  ;;  %v1454_v11 = vpop.f32.mrb[34].mxu0  ;;  %1718 = vmatprep.mubr.bf16.mxu1 %v1538_v61 }
 0x249   : > { %v2520_v22 = vadd.f32 %v1454_v11, %v3474_v56  ;;  %v1456_v46 = vpop.f32.mrb[35].mxu0  ;;  %1719 = vmatmul.mubr.bf16.vlgmr.msra.gmra.mrb[44].mxu1 %v1537_v39  ;;  %v1513_v62 = vmax.f32 %v2518_v9, 0.0 }
 0x24a   : > { %v2521_v55 = vadd.f32 %v1456_v46, %v3478_v18  ;;  %v1514_v17 = vmax.f32 %v2519_v7, 0.0 }
 0x24b   : > { %v1515_v15 = vmax.f32 %v2520_v22, 0.0 }
 0x24c   : > { %v1516_v16 = vmax.f32 %v2521_v55, 0.0 }
 0x24d   : > { %v1539_v2 = vpack.c.bf16 %v1515_v15, %v1513_v62 }
 0x24e   : > { %v1540_v48 = vpack.c.bf16 %v1516_v16, %v1514_v17  ;;  %v1460_v20 = vpop.f32.mrb[36].mxu0 }
 0x24f   : > { %v2522_v23 = vadd.f32 %v1460_v20, %v3474_v56  ;;  %v1462_v21 = vpop.f32.mrb[37].mxu0 }
 0x250   : > { %v2523_v24 = vadd.f32 %v1462_v21, %v3478_v18  ;;  %v1464_v25 = vpop.f32.mrb[38].mxu0  ;;  %1726 = vmatprep.mubr.bf16.mxu1 %v1540_v48 }
 0x251   : > { %v2524_v51 = vadd.f32 %v1464_v25, %v3474_v56  ;;  %v1466_v45 = vpop.f32.mrb[39].mxu0  ;;  %1727 = vmatmul.mubr.bf16.gmra.mrb[48].mxu1 %v1539_v2  ;;  %v1517_v57 = vmax.f32 %v2522_v23, 0.0  ;;  %v3529_v56 = vand.u32 127, %v395_v41 }
 0x252   : > { %v2525_v54 = vadd.f32 %v1466_v45, %v3478_v18  ;;  %v1518_v42 = vmax.f32 %v2523_v24, 0.0 }
 0x253   : > { %v1519_v5 = vmax.f32 %v2524_v51, 0.0  ;;  %vm1777_vm0 = vcmp.lt.s32.totalorder %v3529_v56, 10  ;;  %vm2058_vm15 = vcmp.eq.s32.totalorder %v3529_v56, 10 }
 0x254   : > { %v1520_v47 = vmax.f32 %v2525_v54, 0.0 }
 0x255   : > { %v1541_v59 = vpack.c.bf16 %v1519_v5, %v1517_v57 }
 0x256   : > { %v1542_v3 = vpack.c.bf16 %v1520_v47, %v1518_v42 }
 0x258   : > { %1734 = vmatprep.mubr.bf16.mxu1 %v1542_v3 }
 0x259   : > { %1735 = vmatmul.mubr.bf16.gmra.mrb[52].mxu1 %v1541_v59 }
 0x25a   : > { %1742 = vmatprep.mubr.bf16.mxu1 %v3489_v63  ;;  %v3534_v63 = vld [vmem:[%s3848_s7] ss:$0 sm:$0xff] }
 0x261   : > { %1743 = vmatmul.mubr.bf16.gmra.mrb[56].mxu1 %v3486_v58 }
 0x262   : > { %1750 = vmatprep.mubr.bf16.mxu1 %v3497_v44 }
 0x269   : > { %1751 = vmatmul.mubr.bf16.gmra.mrb[60].mxu1 %v3494_v6 }
 0x26a   : > { %1758 = vmatprep.mubr.bf16.mxu1 %v3505_v43 }
 0x271   : > { %1759 = vmatmul.mubr.bf16.gmra.mrb[64].mxu1 %v3502_v26 }
 0x272   : > { %1766 = vmatprep.mubr.bf16.mxu1 %v1550_v10 }
 0x279   : > { %1767 = vmatmul.mubr.bf16.gmra.mrb[68].mxu1 %v1549_v52 }
 0x31c   : > { %v2440_v18 = vpop.f32.mrb[44].mxu1 }
 0x31d   : > { %v2441_v58 = vpop.f32.mrb[45].mxu1 }
 0x31e   : > { %v2442_v27 = vadd.f32 %v2441_v58, %v2440_v18  ;;  %v2443_v44 = vpop.f32.mrb[46].mxu1 }
 0x31f   : > { %v2444_v40 = vpop.f32.mrb[47].mxu1 }
 0x320   : > { %v3538_v6 = vadd.f32 %v2442_v27, %v3534_v63  ;;  %v2445_v26 = vadd.f32 %v2444_v40, %v2443_v44 }
 0x322   : > { %v3541_v43 = vadd.f32 %v2445_v26, %v3534_v63  ;;  %v3546_v41 = vsel %vm1777_vm0, %v3538_v6, -1e+30 }
 0x323   : > { %1792 = vmax.xlane.f32.xlu0 %v3546_v41 }
 0x324   : > { %v2446_v50 = vpop.f32.mrb[48].mxu1  ;;  %v3552_v4 = vsel %vm1777_vm0, %v3541_v43, -1e+30 }
 0x325   : > { %v2447_v0 = vpop.f32.mrb[49].mxu1 }
 0x326   : > { %v2448_v28 = vadd.f32 %v2447_v0, %v2446_v50  ;;  %v2449_v60 = vpop.f32.mrb[50].mxu1 }
 0x327   : > { %v2450_v1 = vpop.f32.mrb[51].mxu1  ;;  %1794 = vmax.xlane.f32.xlu0 %v3552_v4 }
 0x328   : > { %v3556_v49 = vadd.f32 %v2448_v28, %v3534_v63  ;;  %v2451_v53 = vadd.f32 %v2450_v1, %v2449_v60  ;;  %v1944_v28 = vld [vmem:[%s3457_s26 + $0x60] sm:$0xff]  ;;  %v1945_v60 = vld [vmem:[%s3457_s26 + $0x68] sm:$0xff] }
 0x32a   : > { %v3559_v19 = vadd.f32 %v2451_v53, %v3534_v63  ;;  %v3564_v52 = vsel %vm1777_vm0, %v3556_v49, -1e+30 }
 0x32b   : > { %1796 = vmax.xlane.f32.xlu1 %v3564_v52 }
 0x32c   : > { %v2452_v10 = vpop.f32.mrb[52].mxu1  ;;  %v3570_v30 = vsel %vm1777_vm0, %v3559_v19, -1e+30 }
 0x32d   : > { %v2453_v14 = vpop.f32.mrb[53].mxu1 }
 0x32e   : > { %v2454_v29 = vadd.f32 %v2453_v14, %v2452_v10  ;;  %v2455_v13 = vpop.f32.mrb[54].mxu1  ;;  %v1948_v10 = vpop.permute.xlu0 %1947 }
 0x32f   : > { %v2456_v31 = vpop.f32.mrb[55].mxu1  ;;  %1798 = vmax.xlane.f32.xlu1 %v3570_v30  ;;  %vm1988_vm1 = vcmp.eq.s32.totalorder %v3529_v56, %v1948_v10 }
 0x330   : > { %v3574_v32 = vadd.f32 %v2454_v29, %v3534_v63  ;;  %v2457_v33 = vadd.f32 %v2456_v31, %v2455_v13  ;;  %v2002_v29 = vsel %vm1988_vm1, %v3538_v6, 0.0 }
 0x332   : > { %v3577_v34 = vadd.f32 %v2457_v33, %v3534_v63  ;;  %v3582_v35 = vsel %vm1777_vm0, %v3574_v32, -1e+30 }
 0x333   : > { %1800 = vmax.xlane.f32.xlu0 %v3582_v35 }
 0x334   : > { %v2458_v36 = vpop.f32.mrb[56].mxu1  ;;  %v3588_v37 = vsel %vm1777_vm0, %v3577_v34, -1e+30 }
 0x335   : > { %1802 = vmax.xlane.f32.xlu1 %v3588_v37  ;;  %v2459_v38 = vpop.f32.mrb[57].mxu1 }
 0x336   : > { %v2460_v39 = vadd.f32 %v2459_v38, %v2458_v36  ;;  %v2461_v61 = vpop.f32.mrb[58].mxu1 }
 0x337   : > { %v2462_v8 = vpop.f32.mrb[59].mxu1 }
 0x338   : > { %v3592_v9 = vadd.f32 %v2460_v39, %v3534_v63  ;;  %v2463_v12 = vadd.f32 %v2462_v8, %v2461_v61  ;;  %v3679_v8 = vpop.permute.xlu0 %1974 }
 0x339   : > { %vm1997_vm10 = vcmp.eq.s32.totalorder %v3529_v56, %v3679_v8 }
 0x33a   : > { %v3595_v7 = vadd.f32 %v2463_v12, %v3534_v63  ;;  %v3600_v11 = vsel %vm1777_vm0, %v3592_v9, -1e+30 }
 0x33b   : > { %1804 = vmax.xlane.f32.xlu0 %v3600_v11 }
 0x33c   : > { %v2464_v22 = vpop.f32.mrb[60].mxu1  ;;  %v3606_v46 = vsel %vm1777_vm0, %v3595_v7, -1e+30 }
 0x33d   : > { %v2465_v55 = vpop.f32.mrb[61].mxu1  ;;  %1806 = vmax.xlane.f32.xlu1 %v3606_v46 }
 0x33e   : > { %v2466_v62 = vadd.f32 %v2465_v55, %v2464_v22  ;;  %v2467_v15 = vpop.f32.mrb[62].mxu1  ;;  %v3683_v22 = vpop.permute.xlu0 %1980 }
 0x33f   : > { %v2468_v17 = vpop.f32.mrb[63].mxu1  ;;  %vm1999_vm12 = vcmp.eq.s32.totalorder %v3529_v56, %v3683_v22 }
 0x340   : > { %v3610_v16 = vadd.f32 %v2466_v62, %v3534_v63  ;;  %v2469_v2 = vadd.f32 %v2468_v17, %v2467_v15 }
 0x342   : > { %v3613_v48 = vadd.f32 %v2469_v2, %v3534_v63  ;;  %v3618_v20 = vsel %vm1777_vm0, %v3610_v16, -1e+30 }
 0x343   : > { %1808 = vmax.xlane.f32.xlu0 %v3618_v20 }
 0x344   : > { %v2470_v23 = vpop.f32.mrb[64].mxu1  ;;  %v3624_v21 = vsel %vm1777_vm0, %v3613_v48, -1e+30 }
 0x345   : > { %v2471_v24 = vpop.f32.mrb[65].mxu1  ;;  %1810 = vmax.xlane.f32.xlu1 %v3624_v21 }
 0x346   : > { %v2472_v25 = vadd.f32 %v2471_v24, %v2470_v23  ;;  %v2473_v51 = vpop.f32.mrb[66].mxu1 }
 0x347   : > { %v2474_v45 = vpop.f32.mrb[67].mxu1 }
 0x348   : > { %v3628_v54 = vadd.f32 %v2472_v25, %v3534_v63  ;;  %v2475_v57 = vadd.f32 %v2474_v45, %v2473_v51 }
 0x34a   : > { %v3631_v5 = vadd.f32 %v2475_v57, %v3534_v63  ;;  %v3636_v42 = vsel %vm1777_vm0, %v3628_v54, -1e+30 }
 0x34b   : > { %1812 = vmax.xlane.f32.xlu0 %v3636_v42 }
 0x34c   : > { %v2476_v47 = vpop.f32.mrb[68].mxu1  ;;  %v3642_v59 = vsel %vm1777_vm0, %v3631_v5, -1e+30  ;;  %v2013_v8 = vsel %vm1999_vm12, %v3631_v5, 0.0 }
 0x34d   : > { %v2477_v3 = vpop.f32.mrb[69].mxu1  ;;  %1814 = vmax.xlane.f32.xlu1 %v3642_v59 }
 0x34e   : > { %v2478_v18 = vadd.f32 %v2477_v3, %v2476_v47  ;;  %v2479_v58 = vpop.f32.mrb[70].mxu1 }
 0x34f   : > { %v2480_v27 = vpop.f32.mrb[71].mxu1 }
 0x350   : > { %v3646_v44 = vadd.f32 %v2478_v18, %v3534_v63  ;;  %v2481_v40 = vadd.f32 %v2480_v27, %v2479_v58 }
 0x352   : > { %v3649_v26 = vadd.f32 %v2481_v40, %v3534_v63  ;;  %v3654_v50 = vsel %vm1777_vm0, %v3646_v44, -1e+30  ;;  %v1951_v63 = vpop.permute.xlu1 %1950 }
 0x353   : > { %1816 = vmax.xlane.f32.xlu0 %v3654_v50  ;;  %vm1989_vm2 = vcmp.eq.s32.totalorder %v3529_v56, %v1951_v63 }
 0x354   : > { %v3660_v0 = vsel %vm1777_vm0, %v3649_v26, -1e+30  ;;  %v2003_v13 = vsel %vm1989_vm2, %v3541_v43, 0.0 }
 0x355   : > { %1818 = vmax.xlane.f32.xlu1 %v3660_v0 }
 0x356   : > { %v1954_v1 = vpop.permute.xlu1 %1953 }
 0x357   : > { %vm1990_vm3 = vcmp.eq.s32.totalorder %v3529_v56, %v1954_v1 }
 0x358   : > { %v2004_v33 = vsel %vm1990_vm3, %v3556_v49, 0.0 }
 0x35a   : > { %v1957_v53 = vpop.permute.xlu1 %1956 }
 0x35b   : > { %vm1991_vm4 = vcmp.eq.s32.totalorder %v3529_v56, %v1957_v53 }
 0x35c   : > { %v2005_v36 = vsel %vm1991_vm4, %v3559_v19, 0.0 }
 0x35e   : > { %v1960_v14 = vpop.permute.xlu1 %1959 }
 0x35f   : > { %vm1992_vm5 = vcmp.eq.s32.totalorder %v3529_v56, %v1960_v14 }
 0x360   : > { %v2006_v38 = vsel %vm1992_vm5, %v3574_v32, 0.0 }
 0x362   : > { %v1963_v31 = vpop.permute.xlu1 %1962 }
 0x363   : > { %vm1993_vm6 = vcmp.eq.s32.totalorder %v3529_v56, %v1963_v31 }
 0x364   : > { %v2007_v39 = vsel %vm1993_vm6, %v3577_v34, 0.0 }
 0x366   : > { %1983 = vperm.xlu1 %2593, %v1944_v28   ;;  %v3677_v61 = vpop.permute.xlu1 %1965 }
 0x367   : > { %vm1994_vm7 = vcmp.eq.s32.totalorder %v3529_v56, %v3677_v61 }
 0x369   : > { %1986 = vperm.xlu0 %2592, %v1945_v60  }
 0x36a   : > { %v3681_v12 = vpop.permute.xlu1 %1968 }
 0x36b   : > { %vm1995_vm8 = vcmp.eq.s32.totalorder %v3529_v56, %v3681_v12 }
 0x36e   : > { %v3685_v55 = vpop.permute.xlu1 %1971 }
 0x36f   : > { %vm1996_vm9 = vcmp.eq.s32.totalorder %v3529_v56, %v3685_v55 }
 0x370   : > { %v2010_v61 = vsel %vm1996_vm9, %v3610_v16, 0.0 }
 0x372   : > { %v3691_v2 = vpop.permute.xlu1 %1977 }
 0x373   : > { %vm1998_vm11 = vcmp.eq.s32.totalorder %v3529_v56, %v3691_v2 }
 0x388   : > { %2016 = vadd.xlane.f32.xlu0 %v2002_v29 }
 0x38a   : > { %2018 = vadd.xlane.f32.xlu1 %v2003_v13 }
 0x38c   : > { %2020 = vadd.xlane.f32.xlu0 %v2004_v33 }
 0x38e   : > { %2022 = vadd.xlane.f32.xlu1 %v2005_v36 }
 0x390   : > { %2024 = vadd.xlane.f32.xlu0 %v2006_v38 }
 0x392   : > { %2026 = vadd.xlane.f32.xlu1 %v2007_v39 }
 0x3b0   : > { %v3687_v62 = vpop.xlane.xlu0 %1792 }
 0x3b1   : > { %v1820_v15 = vsub.f32 %v3546_v41, %v3687_v62 }
 0x3b3   : > { %v1834_v17 = vmul.f32 1.442695, %v1820_v15 }
 0x3b4   : > { %v3693_v23 = vpop.xlane.xlu0 %1794 }
 0x3b5   : > { %2761 = vpow2.f32 %v1834_v17  ;;  %v1821_v24 = vsub.f32 %v3552_v4, %v3693_v23 }
 0x3b7   : > { %v1836_v25 = vmul.f32 1.442695, %v1821_v24 }
 0x3b8   : > { %v3697_v51 = vpop.xlane.xlu1 %1796 }
 0x3b9   : > { %2763 = vpow2.f32 %v1836_v25  ;;  %v1822_v45 = vsub.f32 %v3564_v52, %v3697_v51 }
 0x3bb   : > { %v1838_v57 = vmul.f32 1.442695, %v1822_v45 }
 0x3bc   : > { %v3701_v47 = vpop.xlane.xlu1 %1798 }
 0x3bd   : > { %2765 = vpow2.f32 %v1838_v57  ;;  %v1823_v41 = vsub.f32 %v3570_v30, %v3701_v47 }
 0x3bf   : > { %v2762_v3 = vpop.eup %2761  ;;  %v1840_v18 = vmul.f32 1.442695, %v1823_v41 }
 0x3c0   : > { %v3705_v58 = vpop.xlane.xlu0 %1800  ;;  %1862 = vadd.xlane.f32.xlu1 %v2762_v3 }
 0x3c1   : > { %2767 = vpow2.f32 %v1840_v18  ;;  %v1824_v4 = vsub.f32 %v3582_v35, %v3705_v58 }
 0x3c2   : > { %v3709_v27 = vpop.xlane.xlu1 %1802 }
 0x3c3   : > { %v2764_v40 = vpop.eup %2763  ;;  %v1842_v52 = vmul.f32 1.442695, %v1824_v4  ;;  %v1825_v28 = vsub.f32 %v3588_v37, %v3709_v27 }
 0x3c4   : > { %1864 = vadd.xlane.f32.xlu0 %v2764_v40 }
 0x3c5   : > { %2769 = vpow2.f32 %v1842_v52  ;;  %v1844_v60 = vmul.f32 1.442695, %v1825_v28 }
 0x3c7   : > { %v2766_v30 = vpop.eup %2765  ;;  %2771 = vpow2.f32 %v1844_v60 }
 0x3c8   : > { %1866 = vadd.xlane.f32.xlu0 %v2766_v30  ;;  %v3713_v63 = vpop.xlane.xlu0 %1804  ;;  %v2008_v30 = vsel %vm1994_vm7, %v3592_v9, 0.0 }
 0x3c9   : > { %v1826_v1 = vsub.f32 %v3600_v11, %v3713_v63 }
 0x3ca   : > { %v3717_v53 = vpop.xlane.xlu1 %1806 }
 0x3cb   : > { %v2768_v35 = vpop.eup %2767  ;;  %v1846_v10 = vmul.f32 1.442695, %v1826_v1  ;;  %v1827_v14 = vsub.f32 %v3606_v46, %v3717_v53  ;;  %v2011_v1 = vsel %vm1997_vm10, %v3613_v48, 0.0 }
 0x3cc   : > { %1868 = vadd.xlane.f32.xlu1 %v2768_v35  ;;  %v2012_v35 = vsel %vm1998_vm11, %v3628_v54, 0.0 }
 0x3cd   : > { %2773 = vpow2.f32 %v1846_v10  ;;  %v1848_v37 = vmul.f32 1.442695, %v1827_v14 }
 0x3cf   : > { %v2770_v29 = vpop.eup %2769  ;;  %2775 = vpow2.f32 %v1848_v37 }
 0x3d0   : > { %1870 = vadd.xlane.f32.xlu0 %v2770_v29  ;;  %v3721_v13 = vpop.xlane.xlu0 %1808 }
 0x3d1   : > { %v2772_v31 = vpop.eup %2771  ;;  %v1828_v33 = vsub.f32 %v3618_v20, %v3721_v13 }
 0x3d2   : > { %1872 = vadd.xlane.f32.xlu1 %v2772_v31  ;;  %v3725_v11 = vpop.xlane.xlu1 %1810 }
 0x3d3   : > { %v1850_v36 = vmul.f32 1.442695, %v1828_v33  ;;  %v1829_v38 = vsub.f32 %v3624_v21, %v3725_v11 }
 0x3d5   : > { %2777 = vpow2.f32 %v1850_v36  ;;  %v1852_v46 = vmul.f32 1.442695, %v1829_v38 }
 0x3d7   : > { %v2774_v39 = vpop.eup %2773  ;;  %2779 = vpow2.f32 %v1852_v46 }
 0x3d8   : > { %1874 = vadd.xlane.f32.xlu0 %v2774_v39  ;;  %v3729_v15 = vpop.xlane.xlu0 %1812 }
 0x3d9   : > { %v2776_v17 = vpop.eup %2775  ;;  %v1830_v24 = vsub.f32 %v3636_v42, %v3729_v15 }
 0x3da   : > { %1876 = vadd.xlane.f32.xlu1 %v2776_v17  ;;  %v3733_v20 = vpop.xlane.xlu1 %1814 }
 0x3db   : > { %v1854_v25 = vmul.f32 1.442695, %v1830_v24  ;;  %v1831_v45 = vsub.f32 %v3642_v59, %v3733_v20 }
 0x3dd   : > { %2781 = vpow2.f32 %v1854_v25  ;;  %v1856_v21 = vmul.f32 1.442695, %v1831_v45 }
 0x3df   : > { %v2778_v57 = vpop.eup %2777  ;;  %2783 = vpow2.f32 %v1856_v21 }
 0x3e0   : > { %1878 = vadd.xlane.f32.xlu0 %v2778_v57  ;;  %v3737_v41 = vpop.xlane.xlu0 %1816 }
 0x3e1   : > { %v2780_v3 = vpop.eup %2779  ;;  %v1832_v18 = vsub.f32 %v3654_v50, %v3737_v41 }
 0x3e2   : > { %1880 = vadd.xlane.f32.xlu1 %v2780_v3  ;;  %v3741_v42 = vpop.xlane.xlu1 %1818 }
 0x3e3   : > { %v1858_v4 = vmul.f32 1.442695, %v1832_v18  ;;  %v1833_v40 = vsub.f32 %v3660_v0, %v3741_v42  ;;  %v2009_v0 = vsel %vm1995_vm8, %v3595_v7, 0.0 }
 0x3e5   : > { %2785 = vpow2.f32 %v1858_v4  ;;  %v1860_v59 = vmul.f32 1.442695, %v1833_v40 }
 0x3e6   : > { %v1984_v12 = vpop.permute.xlu1 %1983 }
 0x3e7   : > { %v2782_v52 = vpop.eup %2781  ;;  %2787 = vpow2.f32 %v1860_v59  ;;  %vm2000_vm13 = vcmp.eq.s32.totalorder %v3529_v56, %v1984_v12 }
 0x3e8   : > { %1882 = vadd.xlane.f32.xlu0 %v2782_v52  ;;  %v1987_v55 = vpop.permute.xlu0 %1986  ;;  %v2014_v2 = vsel %vm2000_vm13, %v3646_v44, 0.0 }
 0x3e9   : > { %v2784_v28 = vpop.eup %2783  ;;  %vm2001_vm14 = vcmp.eq.s32.totalorder %v3529_v56, %v1987_v55 }
 0x3ea   : > { %1884 = vadd.xlane.f32.xlu1 %v2784_v28  ;;  %v2015_v10 = vsel %vm2001_vm14, %v3649_v26, 0.0 }
 0x3ef   : > { %v2786_v60 = vpop.eup %2785 }
 0x3f0   : > { %1886 = vadd.xlane.f32.xlu0 %v2786_v60 }
 0x3f1   : > { %v2788_v50 = vpop.eup %2787 }
 0x3f2   : > { %1888 = vadd.xlane.f32.xlu1 %v2788_v50 }
 0x3f4   : > { %2028 = vadd.xlane.f32.xlu0 %v2008_v30 }
 0x3f6   : > { %2030 = vadd.xlane.f32.xlu1 %v2009_v0 }
 0x3f8   : > { %2032 = vadd.xlane.f32.xlu0 %v2010_v61 }
 0x3fa   : > { %2034 = vadd.xlane.f32.xlu1 %v2011_v1 }
 0x3fc   : > { %2036 = vadd.xlane.f32.xlu0 %v2012_v35 }
 0x3fe   : > { %2038 = vadd.xlane.f32.xlu1 %v2013_v8 }
 0x400   : > { %2040 = vadd.xlane.f32.xlu0 %v2014_v2 }
 0x402   : > { %2042 = vadd.xlane.f32.xlu1 %v2015_v10 }
 0x415   : > { %v2017_v22 = vpop.xlane.xlu0 %2016 }
 0x417   : > { %v2019_v14 = vpop.xlane.xlu1 %2018 }
 0x419   : > { %v2021_v29 = vpop.xlane.xlu0 %2020 }
 0x41b   : > { %v2023_v37 = vpop.xlane.xlu1 %2022 }
 0x41d   : > { %v2025_v33 = vpop.xlane.xlu0 %2024 }
 0x41f   : > { %v2027_v31 = vpop.xlane.xlu1 %2026 }
 0x44d   : > { %v1863_v36 = vpop.xlane.xlu1 %1862 }
 0x44e   : > { %2789 = vlog2.f32 %v1863_v36 }
 0x451   : > { %v1865_v38 = vpop.xlane.xlu0 %1864 }
 0x452   : > { %2791 = vlog2.f32 %v1865_v38 }
 0x455   : > { %v1867_v46 = vpop.xlane.xlu0 %1866 }
 0x456   : > { %2793 = vlog2.f32 %v1867_v46 }
 0x458   : > { %v2790_v39 = vpop.eup %2789 }
 0x459   : > { %v1891_v17 = vmul.f32 0.6931472, %v2790_v39  ;;  %v1869_v24 = vpop.xlane.xlu1 %1868 }
 0x45a   : > { %2795 = vlog2.f32 %v1869_v24 }
 0x45b   : > { %v1918_v25 = vadd.f32 %v1891_v17, %v3687_v62 }
 0x45c   : > { %v2792_v45 = vpop.eup %2791 }
 0x45d   : > { %v1893_v21 = vmul.f32 0.6931472, %v2792_v45  ;;  %v1871_v57 = vpop.xlane.xlu0 %1870  ;;  %v2044_v3 = vsub.f32 %v1918_v25, %v2017_v22 }
 0x45e   : > { %2797 = vlog2.f32 %v1871_v57 }
 0x45f   : > { %v1919_v18 = vadd.f32 %v1893_v21, %v3693_v23  ;;  %v1873_v4 = vpop.xlane.xlu1 %1872  ;;  %v2059_v28 = vsel %vm2058_vm15, %v2044_v3, %v3538_v6 }
 0x460   : > { %v2794_v40 = vpop.eup %2793  ;;  %2799 = vlog2.f32 %v1873_v4 }
 0x461   : > { %v2045_v59 = vsub.f32 %v1919_v18, %v2019_v14  ;;  %v1895_v52 = vmul.f32 0.6931472, %v2794_v40 }
 0x463   : > { %v2060_v62 = vsel %vm2058_vm15, %v2045_v59, %v3541_v43  ;;  %v1920_v23 = vadd.f32 %v1895_v52, %v3697_v51 }
 0x464   : > { %v2796_v60 = vpop.eup %2795  ;;  %v2386_v50 = vpack.c.bf16 %v2060_v62, %v2059_v28 }
 0x465   : > { %v1897_v30 = vmul.f32 0.6931472, %v2796_v60  ;;  %v2046_v0 = vsub.f32 %v1920_v23, %v2021_v29  ;;  %v1875_v10 = vpop.xlane.xlu0 %1874 }
 0x466   : > { %2387 = vst [vmem:[%s3778_s13] sm:$0xff] %v2386_v50   ;;  %2801 = vlog2.f32 %v1875_v10 }
 0x467   : > { %v1921_v6 = vadd.f32 %v1897_v30, %v3701_v47  ;;  %v2061_v35 = vsel %vm2058_vm15, %v2046_v0, %v3556_v49  ;;  %v1877_v22 = vpop.xlane.xlu1 %1876 }
 0x468   : > { %v2798_v61 = vpop.eup %2797  ;;  %2803 = vlog2.f32 %v1877_v22 }
 0x469   : > { %v2047_v12 = vsub.f32 %v1921_v6, %v2023_v37  ;;  %v1899_v1 = vmul.f32 0.6931472, %v2798_v61 }
 0x46a   : > { %v2800_v55 = vpop.eup %2799 }
 0x46b   : > { %v2062_v43 = vsel %vm2058_vm15, %v2047_v12, %v3559_v19  ;;  %v1922_v51 = vadd.f32 %v1899_v1, %v3705_v58  ;;  %v1901_v8 = vmul.f32 0.6931472, %v2800_v55 }
 0x46c   : > { %v2391_v2 = vpack.c.bf16 %v2062_v43, %v2061_v35 }
 0x46d   : > { %v2048_v14 = vsub.f32 %v1922_v51, %v2025_v33  ;;  %v1923_v47 = vadd.f32 %v1901_v8, %v3709_v27  ;;  %v1879_v29 = vpop.xlane.xlu0 %1878 }
 0x46e   : > { %2418 = vst [vmem:[%s3778_s13 + $0x8] sm:$0xff] %v2391_v2   ;;  %2805 = vlog2.f32 %v1879_v29 }
 0x46f   : > { %v2049_v37 = vsub.f32 %v1923_v47, %v2027_v31  ;;  %v2063_v49 = vsel %vm2058_vm15, %v2048_v14, %v3574_v32  ;;  %v1881_v58 = vpop.xlane.xlu1 %1880 }
 0x470   : > { %2807 = vlog2.f32 %v1881_v58  ;;  %v2802_v31 = vpop.eup %2801 }
 0x471   : > { %v2064_v19 = vsel %vm2058_vm15, %v2049_v37, %v3577_v34  ;;  %v1903_v46 = vmul.f32 0.6931472, %v2802_v31 }
 0x472   : > { %v2396_v36 = vpack.c.bf16 %v2064_v19, %v2063_v49  ;;  %v2804_v38 = vpop.eup %2803 }
 0x473   : > { %v1905_v24 = vmul.f32 0.6931472, %v2804_v38  ;;  %v1924_v45 = vadd.f32 %v1903_v46, %v3713_v63 }
 0x474   : > { %2419 = vst [vmem:[%s3778_s13 + $0x10] sm:$0xff] %v2396_v36  }
 0x475   : > { %v1883_v27 = vpop.xlane.xlu0 %1882  ;;  %v1925_v4 = vadd.f32 %v1905_v24, %v3717_v53 }
 0x476   : > { %2809 = vlog2.f32 %v1883_v27 }
 0x477   : > { %v1885_v33 = vpop.xlane.xlu1 %1884 }
 0x478   : > { %2811 = vlog2.f32 %v1885_v33  ;;  %v2806_v39 = vpop.eup %2805 }
 0x479   : > { %v1907_v34 = vmul.f32 0.6931472, %v2806_v39 }
 0x47a   : > { %v2808_v32 = vpop.eup %2807 }
 0x47b   : > { %v1909_v57 = vmul.f32 0.6931472, %v2808_v32  ;;  %v1926_v62 = vadd.f32 %v1907_v34, %v3721_v13 }
 0x47d   : > { %v1887_v17 = vpop.xlane.xlu0 %1886  ;;  %v1927_v60 = vadd.f32 %v1909_v57, %v3725_v11 }
 0x47e   : > { %2813 = vlog2.f32 %v1887_v17 }
 0x47f   : > { %v1889_v25 = vpop.xlane.xlu1 %1888 }
 0x480   : > { %2815 = vlog2.f32 %v1889_v25  ;;  %v2810_v21 = vpop.eup %2809 }
 0x481   : > { %v2029_v3 = vpop.xlane.xlu0 %2028  ;;  %v1911_v52 = vmul.f32 0.6931472, %v2810_v21 }
 0x482   : > { %v2050_v18 = vsub.f32 %v1924_v45, %v2029_v3  ;;  %v2812_v40 = vpop.eup %2811 }
 0x483   : > { %v2031_v59 = vpop.xlane.xlu1 %2030  ;;  %v1913_v50 = vmul.f32 0.6931472, %v2812_v40  ;;  %v1928_v13 = vadd.f32 %v1911_v52, %v3729_v15 }
 0x484   : > { %v2051_v28 = vsub.f32 %v1925_v4, %v2031_v59  ;;  %v2065_v63 = vsel %vm2058_vm15, %v2050_v18, %v3592_v9 }
 0x485   : > { %v2033_v23 = vpop.xlane.xlu0 %2032  ;;  %v1929_v43 = vadd.f32 %v1913_v50, %v3733_v20 }
 0x486   : > { %v2066_v30 = vsel %vm2058_vm15, %v2051_v28, %v3595_v7  ;;  %v2052_v53 = vsub.f32 %v1926_v62, %v2033_v23 }
 0x487   : > { %v2401_v0 = vpack.c.bf16 %v2066_v30, %v2065_v63  ;;  %v2035_v6 = vpop.xlane.xlu1 %2034 }
 0x488   : > { %v2814_v61 = vpop.eup %2813  ;;  %v2053_v12 = vsub.f32 %v1927_v60, %v2035_v6  ;;  %v2067_v9 = vsel %vm2058_vm15, %v2052_v53, %v3610_v16 }
 0x489   : > { %v1915_v1 = vmul.f32 0.6931472, %v2814_v61  ;;  %2420 = vst [vmem:[%s3778_s13 + $0x18] sm:$0xff] %v2401_v0   ;;  %v2037_v11 = vpop.xlane.xlu0 %2036 }
 0x48a   : > { %v2816_v55 = vpop.eup %2815  ;;  %v2068_v7 = vsel %vm2058_vm15, %v2053_v12, %v3613_v48  ;;  %v2054_v35 = vsub.f32 %v1928_v13, %v2037_v11 }
 0x48b   : > { %v1917_v51 = vmul.f32 0.6931472, %v2816_v55  ;;  %v2406_v8 = vpack.c.bf16 %v2068_v7, %v2067_v9  ;;  %v2039_v2 = vpop.xlane.xlu1 %2038  ;;  %v1930_v15 = vadd.f32 %v1915_v1, %v3737_v41 }
 0x48c   : > { %v2055_v10 = vsub.f32 %v1929_v43, %v2039_v2  ;;  %v2069_v16 = vsel %vm2058_vm15, %v2054_v35, %v3628_v54 }
 0x48d   : > { %2421 = vst [vmem:[%s3778_s13 + $0x20] sm:$0xff] %v2406_v8   ;;  %v2041_v14 = vpop.xlane.xlu0 %2040  ;;  %v1931_v47 = vadd.f32 %v1917_v51, %v3741_v42 }
 0x48e   : > { %v2070_v48 = vsel %vm2058_vm15, %v2055_v10, %v3631_v5  ;;  %v2056_v20 = vsub.f32 %v1930_v15, %v2041_v14 }
 0x48f   : > { %v2411_v22 = vpack.c.bf16 %v2070_v48, %v2069_v16  ;;  %v2043_v37 = vpop.xlane.xlu1 %2042 }
 0x490   : > { %v2057_v29 = vsub.f32 %v1931_v47, %v2043_v37  ;;  %v2071_v41 = vsel %vm2058_vm15, %v2056_v20, %v3646_v44 }
 0x491   : > { %2422 = vst [vmem:[%s3778_s13 + $0x28] sm:$0xff] %v2411_v22  }
 0x492   : > { %v2072_v42 = vsel %vm2058_vm15, %v2057_v29, %v3649_v26 }
 0x493   : > { %v2416_v49 = vpack.c.bf16 %v2072_v42, %v2071_v41 }
 0x495   : > { %2423 = vst [vmem:[%s3778_s13 + $0x30] sm:$0xff] %v2416_v49  }
 0x496 PF: > { %s19_s27 = sadd.s32 1, %s2855_s27  }
 0x497   : > { %p16_p3 = scmp.ge.s32.totalorder %s19_s27, 4  }
 0x499   :  { %18 = sbr.rel (!%p16_p3) target bundleno = 1 (0x1), region = 90 }
 0x4a0   :  { %2165 = vsyncpa [#allocation3], 1 }
 0x4a1   :  { %2167 = vsyncpa [#allocation3 + $0x1], 1 }

</bundles_post_ra>
